<compile_context>
chip_gen: v5e
topology: v5e:2x2
jax: 0.10.0
libtpu: 0.0.40
codegen_flags: <defaults>
</compile_context>

<pallas_src>
import jax
import jax.numpy as jnp
from jax import lax
from jax.experimental import pallas as pl
from jax.experimental.pallas import tpu as pltpu


# ------------------------------ Pallas kernel ------------------------------ #
def _bottleneck_kernel(x_ref, w1_ref, b1_ref, w2_ref, b2_ref,
                       w3_ref, b3_ref, o_ref, yp_ref):
    # x_ref : (H, W, Cin)  bf16   (full image, resident across the h axis)
    # o_ref : (Ht, W, Cout) bf16  (one row block)
    # yp_ref: (Ht+2, W+2, width) bf16 VMEM scratch (zero-padded y1 window)
    H, W, Cin = x_ref.shape
    Ht, _, Cout = o_ref.shape
    width = w1_ref.shape[1]

    hb = pl.program_id(1)
    nh = pl.num_programs(1)
    row0 = pl.multiple_of(hb * Ht, Ht)            # first output row of this block

    w1 = w1_ref[...]                               # (Cin, width) bf16, BN1 scale folded
    b1 = b1_ref[...]                               # (1, width) f32

    # ---- conv1 (1x1) + folded-BN1 bias + ReLU over Ht rows + 2 halo rows ----
    def conv1_rows(rows_bf16):                     # (R, W, Cin) bf16 -> (R, W, width) f32
        r = rows_bf16.shape[0]
        y = jnp.dot(rows_bf16.reshape(r * W, Cin), w1,
                    preferred_element_type=jnp.float32)
        return jnp.maximum(y + b1, 0.0).reshape(r, W, width)

    t_idx = jnp.maximum(row0 - 1, 0)               # clamped; masked at image top
    b_idx = jnp.minimum(row0 + Ht, H - 1)          # clamped; masked at image bottom
    y1_mid = conv1_rows(x_ref[pl.ds(row0, Ht)])
    y1_top = conv1_rows(x_ref[pl.ds(t_idx, 1)]) * (hb > 0).astype(jnp.float32)
    y1_bot = conv1_rows(x_ref[pl.ds(b_idx, 1)]) * (hb + 1 < nh).astype(jnp.float32)

    # Zero-padded y1 window in bf16 VMEM scratch (left/right columns stay zero).
    yp_ref[...] = jnp.zeros(yp_ref.shape, yp_ref.dtype)
    yp_ref[0:1, 1:W + 1, :] = y1_top.astype(jnp.bfloat16)
    yp_ref[1:Ht + 1, 1:W + 1, :] = y1_mid.astype(jnp.bfloat16)
    yp_ref[Ht + 1:Ht + 2, 1:W + 1, :] = y1_bot.astype(jnp.bfloat16)

    # ---- conv2 (3x3, stride 1, pad 1): single im2col matmul, K = 9*width ----
    taps = [yp_ref[ky:ky + Ht, kx:kx + W, :]       # (Ht, W, width) bf16 each
            for ky in range(3) for kx in range(3)]
    col = jnp.concatenate(taps, axis=-1).reshape(Ht * W, 9 * width)
    y2 = jnp.dot(col, w2_ref[...], preferred_element_type=jnp.float32)
    y2 = jnp.maximum(y2 + b2_ref[...], 0.0)        # (Ht*W, width) f32

    # ---- conv3 (1x1) + folded-BN3 bias + identity residual + ReLU -----------
    y3 = jnp.dot(y2.astype(jnp.bfloat16), w3_ref[...],
                 preferred_element_type=jnp.float32) + b3_ref[...]
    # Re-read the residual only now (short live range; no spill across convs).
    xres = x_ref[pl.ds(row0, Ht)].reshape(Ht * W, Cin).astype(jnp.float32)
    out = jnp.maximum(y3 + xres, 0.0)
    o_ref[...] = out.reshape(Ht, W, Cout).astype(o_ref.dtype)


# ------------------------------ wrapper ------------------------------------ #
def bottleneck_forward(x_nhwc, params, *, row_block=8):
    """Fused Bottleneck forward (stride=1, downsample=None). NHWC, bf16 I/O."""
    x = x_nhwc.astype(jnp.bfloat16)
    B, H, W, Cin = x.shape
    w1, w2, w3 = params["w1"], params["w2"], params["w3"]
    width = w1.shape[1]
    Cout = w3.shape[1]
    assert Cout == Cin, "identity residual requires inplanes == planes * 4"

    Ht = row_block if (H % row_block == 0) else H
    grid = (B, H // Ht)

    flops = 2 * B * H * W * (Cin * width + 9 * width * width + width * Cout)
    w_bytes = (Cin * width + 9 * width * width + width * Cout) * 2      # bf16
    bytes_accessed = B * H * W * (Cin + Cout) * 2 + w_bytes + (2 * width + Cout) * 4

    # Double-buffered per-step footprint (x block + out block + weights/biases)
    # + padded-y1 scratch; keep the limit honest and under v7x's 64 MiB.
    vmem_need = (2 * H * W * Cin * 2 + 2 * Ht * W * Cout * 2
                 + 2 * (w_bytes + (2 * width + Cout) * 4)
                 + (Ht + 2) * (W + 2) * 128 * 2)
    vmem_limit = int(min(64 * 1024 * 1024, max(8 * 1024 * 1024, 2 * vmem_need)))

    out = pl.pallas_call(
        _bottleneck_kernel,
        out_shape=jax.ShapeDtypeStruct((B, H, W, Cout), jnp.bfloat16),
        grid_spec=pltpu.PrefetchScalarGridSpec(
            num_scalar_prefetch=0,
            grid=grid,
            in_specs=[
                # Full image per batch, resident across the (inner) h axis.
                pl.BlockSpec((None, H, W, Cin), lambda b, h: (b, 0, 0, 0)),
                pl.BlockSpec((Cin, width), lambda b, h: (0, 0)),
                pl.BlockSpec((1, width), lambda b, h: (0, 0)),
                pl.BlockSpec((9 * width, width), lambda b, h: (0, 0)),
                pl.BlockSpec((1, width), lambda b, h: (0, 0)),
                pl.BlockSpec((width, Cout), lambda b, h: (0, 0)),
                pl.BlockSpec((1, Cout), lambda b, h: (0, 0)),
            ],
            out_specs=pl.BlockSpec((None, Ht, W, Cout), lambda b, h: (b, h, 0, 0)),
            scratch_shapes=[pltpu.VMEM((Ht + 2, W + 2, width), jnp.bfloat16)],
        ),
        compiler_params=pltpu.CompilerParams(
            dimension_semantics=("parallel", "parallel"),
            vmem_limit_bytes=vmem_limit,
        ),
        cost_estimate=pl.CostEstimate(flops=int(flops), transcendentals=0,
                                      bytes_accessed=int(bytes_accessed)),
    )(x, params["w1"], params["b1"], params["w2"], params["b2"],
      params["w3"], params["b3"])
    return out


def bottleneck_forward_nchw(x_nchw, params, *, row_block=8):
    """PyTorch-layout convenience wrapper (adds two HBM transposes; prefer NHWC)."""
    out = bottleneck_forward(jnp.transpose(x_nchw, (0, 2, 3, 1)), params,
                             row_block=row_block)
    return jnp.transpose(out, (0, 3, 1, 2))


# ------------------------------ params -------------------------------------- #
def init_params(key, inplanes, planes, base_width=64, groups=1):
    """Random Bottleneck params; eval-mode BatchNorm folded into weights/bias.

    Matmul-ready, channels-last layouts (BN scale already multiplied in):
      w1: (inplanes, width)        == conv1.weight[:, :, 0, 0].T * s1
      w2: (9*width, width)         == stack_k conv2.weight[:, :, ky, kx].T * s2
      w3: (width, planes*4)        == conv3.weight[:, :, 0, 0].T * s3
      b1/b2/b3: (1, C) f32 folded biases (beta - s*mean).
    """
    width = int(planes * (base_width / 64.0)) * groups
    out_ch = planes * 4
    eps = 1e-5
    ks = jax.random.split(key, 15)

    def bn_fold(kg, kb, km, kv, c):
        gamma = 1.0 + 0.1 * jax.random.normal(kg, (c,), jnp.float32)
        beta = 0.1 * jax.random.normal(kb, (c,), jnp.float32)
        mean = 0.1 * jax.random.normal(km, (c,), jnp.float32)
        var = jnp.abs(jax.random.normal(kv, (c,), jnp.float32)) + 0.5
        s = gamma / jnp.sqrt(var + eps)
        return s, beta - s * mean

    s1, b1 = bn_fold(ks[1], ks[2], ks[3], ks[4], width)
    s2, b2 = bn_fold(ks[6], ks[7], ks[8], ks[9], width)
    s3, b3 = bn_fold(ks[11], ks[12], ks[13], ks[14], out_ch)

    w1 = 0.05 * jax.random.normal(ks[0], (inplanes, width), jnp.float32)
    w2 = 0.05 * jax.random.normal(ks[5], (9, width, width), jnp.float32)
    w3 = 0.05 * jax.random.normal(ks[10], (width, out_ch), jnp.float32)

    return {
        "w1": (w1 * s1[None, :]).astype(jnp.bfloat16),
        "b1": b1.reshape(1, width),
        "w2": (w2 * s2[None, None, :]).reshape(9 * width, width).astype(jnp.bfloat16),
        "b2": b2.reshape(1, width),
        "w3": (w3 * s3[None, :]).astype(jnp.bfloat16),
        "b3": b3.reshape(1, out_ch),
    }


# ------------------------------ reference ----------------------------------- #
def _reference(x_nhwc, params):
    """Pure-JAX f32 reference (same folded weights) for a tolerance check."""
    hp = lax.Precision.HIGHEST
    x = x_nhwc.astype(jnp.float32)
    B, H, W, Cin = x.shape
    w1 = params["w1"].astype(jnp.float32)
    w3 = params["w3"].astype(jnp.float32)
    width = w1.shape[1]
    w2 = params["w2"].astype(jnp.float32).reshape(9, width, width)
    b1 = params["b1"].reshape(1, 1, 1, -1)
    b2 = params["b2"].reshape(1, 1, 1, -1)
    b3 = params["b3"].reshape(1, 1, 1, -1)

    y1 = jnp.maximum(jnp.einsum("bhwc,cf->bhwf", x, w1, precision=hp) + b1, 0.0)
    yp = jnp.pad(y1, ((0, 0), (1, 1), (1, 1), (0, 0)))
    acc = 0.0
    for k in range(9):
        ky, kx = divmod(k, 3)
        acc = acc + jnp.einsum("bhwc,cf->bhwf",
                               yp[:, ky:ky + H, kx:kx + W, :], w2[k], precision=hp)
    y2 = jnp.maximum(acc + b2, 0.0)
    y3 = jnp.einsum("bhwc,cf->bhwf", y2, w3, precision=hp) + b3
    return jnp.maximum(y3 + x, 0.0)


if __name__ == "__main__":
    key = jax.random.PRNGKey(0)
    pkey, xkey = jax.random.split(key)

    # Bottleneck(inplanes=128, planes=32): width=32, out channels = 32*4 = 128,
    # stride=1, downsample=None -> identity residual is valid.
    B, inplanes, planes, Hs, Ws = 2, 128, 32, 16, 16
    params = init_params(pkey, inplanes, planes)

    # NHWC bf16 end-to-end (layout plumbing kept out of the HBM path).
    x = jax.random.normal(xkey, (B, Hs, Ws, inplanes), jnp.float32).astype(jnp.bfloat16)

    out = bottleneck_forward(x, params, row_block=8)
    out = jax.block_until_ready(out)

    assert out.shape == (B, Hs, Ws, planes * 4)
    out_f32 = out.astype(jnp.float32)
    assert bool(jnp.all(jnp.isfinite(out_f32)))
    assert bool(jnp.all(out_f32 >= 0.0))           # final ReLU

    ref = _reference(x, params)
    max_err = float(jnp.max(jnp.abs(out_f32 - ref)))
    assert max_err < 1e-1, f"max abs err vs f32 reference: {max_err}"

    print("KERNEL_OK")
</pallas_src>

<mosaic_0001>
module attributes {stable_mosaic.version = 11 : i64} {
  func.func @_bottleneck_kernel(%arg0: i32, %arg1: i32, %arg2: memref<1x16x16x128xbf16, #tpu.memory_space<vmem>>, %arg3: memref<128x32xbf16, #tpu.memory_space<vmem>>, %arg4: memref<1x32xf32, #tpu.memory_space<vmem>>, %arg5: memref<288x32xbf16, #tpu.memory_space<vmem>>, %arg6: memref<1x32xf32, #tpu.memory_space<vmem>>, %arg7: memref<32x128xbf16, #tpu.memory_space<vmem>>, %arg8: memref<1x128xf32, #tpu.memory_space<vmem>>, %arg9: memref<1x8x16x128xbf16, #tpu.memory_space<vmem>>, %arg10: memref<10x18x32xbf16, #tpu.memory_space<vmem>>) attributes {dimension_semantics = [#tpu.dimension_semantics<parallel>, #tpu.dimension_semantics<parallel>], iteration_bounds = array<i64: 2, 2>, scalar_prefetch = 0 : i64, scratch_operands = 1 : i64, tpu.core_type = #tpu.core_type<tc>, window_params = [{transform_indices = @transform_0, window_bounds = array<i64: 1, 16, 16, 128>}, {pipeline_mode = #tpu.pipeline_mode<synchronous>, transform_indices = @transform_1, window_bounds = array<i64: 128, 32>}, {pipeline_mode = #tpu.pipeline_mode<synchronous>, transform_indices = @transform_2, window_bounds = array<i64: 1, 32>}, {pipeline_mode = #tpu.pipeline_mode<synchronous>, transform_indices = @transform_3, window_bounds = array<i64: 288, 32>}, {pipeline_mode = #tpu.pipeline_mode<synchronous>, transform_indices = @transform_4, window_bounds = array<i64: 1, 32>}, {pipeline_mode = #tpu.pipeline_mode<synchronous>, transform_indices = @transform_5, window_bounds = array<i64: 32, 128>}, {pipeline_mode = #tpu.pipeline_mode<synchronous>, transform_indices = @transform_6, window_bounds = array<i64: 1, 128>}, {transform_indices = @transform_7, window_bounds = array<i64: 1, 8, 16, 128>}]} {
    %c8_i32 = arith.constant 8 : i32
    %0 = arith.muli %arg1, %c8_i32 : i32
    %1 = tpu.assume_multiple %0, 8 : i32
    %c0 = arith.constant 0 : index
    %c0_0 = arith.constant 0 : index
    %2 = vector.load %arg3[%c0, %c0_0] : memref<128x32xbf16, #tpu.memory_space<vmem>>, vector<128x32xbf16>
    %c0_1 = arith.constant 0 : index
    %c0_2 = arith.constant 0 : index
    %3 = vector.load %arg4[%c0_1, %c0_2] : memref<1x32xf32, #tpu.memory_space<vmem>>, vector<1x32xf32>
    %c1_i32 = arith.constant 1 : i32
    %4 = arith.subi %1, %c1_i32 : i32
    %c0_i32 = arith.constant 0 : i32
    %5 = arith.maxsi %4, %c0_i32 : i32
    %c8_i32_3 = arith.constant 8 : i32
    %6 = arith.addi %1, %c8_i32_3 : i32
    %c15_i32 = arith.constant 15 : i32
    %7 = arith.minsi %6, %c15_i32 : i32
    %c0_4 = arith.constant 0 : index
    %8 = arith.index_cast %1 : i32 to index
    %c0_5 = arith.constant 0 : index
    %c0_6 = arith.constant 0 : index
    %9 = vector.load %arg2[%c0_4, %8, %c0_5, %c0_6] : memref<1x16x16x128xbf16, #tpu.memory_space<vmem>>, vector<1x8x16x128xbf16>
    %10 = vector.shape_cast %9 : vector<1x8x16x128xbf16> to vector<8x16x128xbf16>
    %11 = vector.shape_cast %10 : vector<8x16x128xbf16> to vector<128x128xbf16>
    %cst = arith.constant dense<0.000000e+00> : vector<128x32xf32>
    %12 = tpu.matmul %11, %2, %cst {dimension_numbers = #tpu.dot_dimension_numbers<[1], [0], [0], [1], [0, 0, 1, 1], [], []>} : vector<128x128xbf16>, vector<128x32xbf16>, vector<128x32xf32> -> vector<128x32xf32>
    %13 = vector.broadcast %3 : vector<1x32xf32> to vector<128x32xf32>
    %14 = arith.addf %12, %13 : vector<128x32xf32>
    %cst_7 = arith.constant 0.000000e+00 : f32
    %15 = vector.broadcast %cst_7 : f32 to vector<128x32xf32>
    %16 = arith.maximumf %14, %15 : vector<128x32xf32>
    %17 = vector.shape_cast %16 : vector<128x32xf32> to vector<8x16x32xf32>
    %c0_8 = arith.constant 0 : index
    %18 = arith.index_cast %5 : i32 to index
    %c0_9 = arith.constant 0 : index
    %c0_10 = arith.constant 0 : index
    %19 = vector.load %arg2[%c0_8, %18, %c0_9, %c0_10] : memref<1x16x16x128xbf16, #tpu.memory_space<vmem>>, vector<1x1x16x128xbf16>
    %20 = vector.shape_cast %19 : vector<1x1x16x128xbf16> to vector<1x16x128xbf16>
    %21 = vector.shape_cast %20 : vector<1x16x128xbf16> to vector<16x128xbf16>
    %cst_11 = arith.constant dense<0.000000e+00> : vector<16x32xf32>
    %22 = tpu.matmul %21, %2, %cst_11 {dimension_numbers = #tpu.dot_dimension_numbers<[1], [0], [0], [1], [0, 0, 1, 1], [], []>} : vector<16x128xbf16>, vector<128x32xbf16>, vector<16x32xf32> -> vector<16x32xf32>
    %23 = vector.broadcast %3 : vector<1x32xf32> to vector<16x32xf32>
    %24 = arith.addf %22, %23 : vector<16x32xf32>
    %cst_12 = arith.constant 0.000000e+00 : f32
    %25 = vector.broadcast %cst_12 : f32 to vector<16x32xf32>
    %26 = arith.maximumf %24, %25 : vector<16x32xf32>
    %27 = vector.shape_cast %26 : vector<16x32xf32> to vector<1x16x32xf32>
    %c0_i32_13 = arith.constant 0 : i32
    %28 = arith.cmpi sgt, %arg1, %c0_i32_13 : i32
    %29 = arith.extui %28 : i1 to i32
    %30 = arith.sitofp %29 : i32 to f32
    %31 = vector.broadcast %30 : f32 to vector<1x16x32xf32>
    %32 = arith.mulf %27, %31 : vector<1x16x32xf32>
    %c0_14 = arith.constant 0 : index
    %33 = arith.index_cast %7 : i32 to index
    %c0_15 = arith.constant 0 : index
    %c0_16 = arith.constant 0 : index
    %34 = vector.load %arg2[%c0_14, %33, %c0_15, %c0_16] : memref<1x16x16x128xbf16, #tpu.memory_space<vmem>>, vector<1x1x16x128xbf16>
    %35 = vector.shape_cast %34 : vector<1x1x16x128xbf16> to vector<1x16x128xbf16>
    %36 = vector.shape_cast %35 : vector<1x16x128xbf16> to vector<16x128xbf16>
    %cst_17 = arith.constant dense<0.000000e+00> : vector<16x32xf32>
    %37 = tpu.matmul %36, %2, %cst_17 {dimension_numbers = #tpu.dot_dimension_numbers<[1], [0], [0], [1], [0, 0, 1, 1], [], []>} : vector<16x128xbf16>, vector<128x32xbf16>, vector<16x32xf32> -> vector<16x32xf32>
    %38 = vector.broadcast %3 : vector<1x32xf32> to vector<16x32xf32>
    %39 = arith.addf %37, %38 : vector<16x32xf32>
    %cst_18 = arith.constant 0.000000e+00 : f32
    %40 = vector.broadcast %cst_18 : f32 to vector<16x32xf32>
    %41 = arith.maximumf %39, %40 : vector<16x32xf32>
    %42 = vector.shape_cast %41 : vector<16x32xf32> to vector<1x16x32xf32>
    %c1_i32_19 = arith.constant 1 : i32
    %43 = arith.addi %arg1, %c1_i32_19 : i32
    %c2_i32 = arith.constant 2 : i32
    %44 = arith.cmpi slt, %43, %c2_i32 : i32
    %45 = arith.extui %44 : i1 to i32
    %46 = arith.sitofp %45 : i32 to f32
    %47 = vector.broadcast %46 : f32 to vector<1x16x32xf32>
    %48 = arith.mulf %42, %47 : vector<1x16x32xf32>
    %cst_20 = arith.constant 0.000000e+00 : bf16
    %49 = vector.broadcast %cst_20 : bf16 to vector<10x18x32xbf16>
    %c0_21 = arith.constant 0 : index
    %c0_22 = arith.constant 0 : index
    %c0_23 = arith.constant 0 : index
    %50 = vector.load %arg10[%c0_21, %c0_22, %c0_23] : memref<10x18x32xbf16, #tpu.memory_space<vmem>>, vector<10x18x32xbf16>
    tpu.vector_store %arg10[%c0_21, %c0_22, %c0_23], %49 {strides = array<i32>} : memref<10x18x32xbf16, #tpu.memory_space<vmem>>, vector<10x18x32xbf16>,
    %51 = arith.truncf %32 : vector<1x16x32xf32> to vector<1x16x32xbf16>
    %c0_24 = arith.constant 0 : index
    %c1 = arith.constant 1 : index
    %c0_25 = arith.constant 0 : index
    %52 = vector.load %arg10[%c0_24, %c1, %c0_25] : memref<10x18x32xbf16, #tpu.memory_space<vmem>>, vector<1x16x32xbf16>
    tpu.vector_store %arg10[%c0_24, %c1, %c0_25], %51 {strides = array<i32>} : memref<10x18x32xbf16, #tpu.memory_space<vmem>>, vector<1x16x32xbf16>,
    %53 = arith.truncf %17 : vector<8x16x32xf32> to vector<8x16x32xbf16>
    %c1_26 = arith.constant 1 : index
    %c1_27 = arith.constant 1 : index
    %c0_28 = arith.constant 0 : index
    %54 = vector.load %arg10[%c1_26, %c1_27, %c0_28] : memref<10x18x32xbf16, #tpu.memory_space<vmem>>, vector<8x16x32xbf16>
    tpu.vector_store %arg10[%c1_26, %c1_27, %c0_28], %53 {strides = array<i32>} : memref<10x18x32xbf16, #tpu.memory_space<vmem>>, vector<8x16x32xbf16>,
    %55 = arith.truncf %48 : vector<1x16x32xf32> to vector<1x16x32xbf16>
    %c9 = arith.constant 9 : index
    %c1_29 = arith.constant 1 : index
    %c0_30 = arith.constant 0 : index
    %56 = vector.load %arg10[%c9, %c1_29, %c0_30] : memref<10x18x32xbf16, #tpu.memory_space<vmem>>, vector<1x16x32xbf16>
    tpu.vector_store %arg10[%c9, %c1_29, %c0_30], %55 {strides = array<i32>} : memref<10x18x32xbf16, #tpu.memory_space<vmem>>, vector<1x16x32xbf16>,
    %c0_31 = arith.constant 0 : index
    %c0_32 = arith.constant 0 : index
    %c0_33 = arith.constant 0 : index
    %57 = vector.load %arg10[%c0_31, %c0_32, %c0_33] : memref<10x18x32xbf16, #tpu.memory_space<vmem>>, vector<8x16x32xbf16>
    %c0_34 = arith.constant 0 : index
    %c1_35 = arith.constant 1 : index
    %c0_36 = arith.constant 0 : index
    %58 = vector.load %arg10[%c0_34, %c1_35, %c0_36] : memref<10x18x32xbf16, #tpu.memory_space<vmem>>, vector<8x16x32xbf16>
    %c0_37 = arith.constant 0 : index
    %c2 = arith.constant 2 : index
    %c0_38 = arith.constant 0 : index
    %59 = vector.load %arg10[%c0_37, %c2, %c0_38] : memref<10x18x32xbf16, #tpu.memory_space<vmem>>, vector<8x16x32xbf16>
    %c1_39 = arith.constant 1 : index
    %c0_40 = arith.constant 0 : index
    %c0_41 = arith.constant 0 : index
    %60 = vector.load %arg10[%c1_39, %c0_40, %c0_41] : memref<10x18x32xbf16, #tpu.memory_space<vmem>>, vector<8x16x32xbf16>
    %c1_42 = arith.constant 1 : index
    %c1_43 = arith.constant 1 : index
    %c0_44 = arith.constant 0 : index
    %61 = vector.load %arg10[%c1_42, %c1_43, %c0_44] : memref<10x18x32xbf16, #tpu.memory_space<vmem>>, vector<8x16x32xbf16>
    %c1_45 = arith.constant 1 : index
    %c2_46 = arith.constant 2 : index
    %c0_47 = arith.constant 0 : index
    %62 = vector.load %arg10[%c1_45, %c2_46, %c0_47] : memref<10x18x32xbf16, #tpu.memory_space<vmem>>, vector<8x16x32xbf16>
    %c2_48 = arith.constant 2 : index
    %c0_49 = arith.constant 0 : index
    %c0_50 = arith.constant 0 : index
    %63 = vector.load %arg10[%c2_48, %c0_49, %c0_50] : memref<10x18x32xbf16, #tpu.memory_space<vmem>>, vector<8x16x32xbf16>
    %c2_51 = arith.constant 2 : index
    %c1_52 = arith.constant 1 : index
    %c0_53 = arith.constant 0 : index
    %64 = vector.load %arg10[%c2_51, %c1_52, %c0_53] : memref<10x18x32xbf16, #tpu.memory_space<vmem>>, vector<8x16x32xbf16>
    %c2_54 = arith.constant 2 : index
    %c2_55 = arith.constant 2 : index
    %c0_56 = arith.constant 0 : index
    %65 = vector.load %arg10[%c2_54, %c2_55, %c0_56] : memref<10x18x32xbf16, #tpu.memory_space<vmem>>, vector<8x16x32xbf16>
    %66 = tpu.concatenate %57, %58, %59, %60, %61, %62, %63, %64, %65 in 2 : vector<8x16x32xbf16>, vector<8x16x32xbf16>, vector<8x16x32xbf16>, vector<8x16x32xbf16>, vector<8x16x32xbf16>, vector<8x16x32xbf16>, vector<8x16x32xbf16>, vector<8x16x32xbf16>, vector<8x16x32xbf16> -> vector<8x16x288xbf16>
    %67 = vector.shape_cast %66 : vector<8x16x288xbf16> to vector<128x288xbf16>
    %c0_57 = arith.constant 0 : index
    %c0_58 = arith.constant 0 : index
    %68 = vector.load %arg5[%c0_57, %c0_58] : memref<288x32xbf16, #tpu.memory_space<vmem>>, vector<288x32xbf16>
    %cst_59 = arith.constant dense<0.000000e+00> : vector<128x32xf32>
    %69 = tpu.matmul %67, %68, %cst_59 {dimension_numbers = #tpu.dot_dimension_numbers<[1], [0], [0], [1], [0, 0, 1, 1], [], []>} : vector<128x288xbf16>, vector<288x32xbf16>, vector<128x32xf32> -> vector<128x32xf32>
    %c0_60 = arith.constant 0 : index
    %c0_61 = arith.constant 0 : index
    %70 = vector.load %arg6[%c0_60, %c0_61] : memref<1x32xf32, #tpu.memory_space<vmem>>, vector<1x32xf32>
    %71 = vector.broadcast %70 : vector<1x32xf32> to vector<128x32xf32>
    %72 = arith.addf %69, %71 : vector<128x32xf32>
    %cst_62 = arith.constant 0.000000e+00 : f32
    %73 = vector.broadcast %cst_62 : f32 to vector<128x32xf32>
    %74 = arith.maximumf %72, %73 : vector<128x32xf32>
    %75 = arith.truncf %74 : vector<128x32xf32> to vector<128x32xbf16>
    %c0_63 = arith.constant 0 : index
    %c0_64 = arith.constant 0 : index
    %76 = vector.load %arg7[%c0_63, %c0_64] : memref<32x128xbf16, #tpu.memory_space<vmem>>, vector<32x128xbf16>
    %cst_65 = arith.constant dense<0.000000e+00> : vector<128x128xf32>
    %77 = tpu.matmul %75, %76, %cst_65 {dimension_numbers = #tpu.dot_dimension_numbers<[1], [0], [0], [1], [0, 0, 1, 1], [], []>} : vector<128x32xbf16>, vector<32x128xbf16>, vector<128x128xf32> -> vector<128x128xf32>
    %c0_66 = arith.constant 0 : index
    %c0_67 = arith.constant 0 : index
    %78 = vector.load %arg8[%c0_66, %c0_67] : memref<1x128xf32, #tpu.memory_space<vmem>>, vector<1x128xf32>
    %79 = vector.broadcast %78 : vector<1x128xf32> to vector<128x128xf32>
    %80 = arith.addf %77, %79 : vector<128x128xf32>
    %c0_68 = arith.constant 0 : index
    %81 = arith.index_cast %1 : i32 to index
    %c0_69 = arith.constant 0 : index
    %c0_70 = arith.constant 0 : index
    %82 = vector.load %arg2[%c0_68, %81, %c0_69, %c0_70] : memref<1x16x16x128xbf16, #tpu.memory_space<vmem>>, vector<1x8x16x128xbf16>
    %83 = vector.shape_cast %82 : vector<1x8x16x128xbf16> to vector<8x16x128xbf16>
    %84 = vector.shape_cast %83 : vector<8x16x128xbf16> to vector<128x128xbf16>
    %85 = arith.extf %84 : vector<128x128xbf16> to vector<128x128xf32>
    %86 = arith.addf %80, %85 : vector<128x128xf32>
    %cst_71 = arith.constant 0.000000e+00 : f32
    %87 = vector.broadcast %cst_71 : f32 to vector<128x128xf32>
    %88 = arith.maximumf %86, %87 : vector<128x128xf32>
    %89 = vector.shape_cast %88 : vector<128x128xf32> to vector<8x16x128xf32>
    %90 = arith.truncf %89 : vector<8x16x128xf32> to vector<8x16x128xbf16>
    %c0_72 = arith.constant 0 : index
    %c0_73 = arith.constant 0 : index
    %c0_74 = arith.constant 0 : index
    %c0_75 = arith.constant 0 : index
    %91 = vector.load %arg9[%c0_72, %c0_73, %c0_74, %c0_75] : memref<1x8x16x128xbf16, #tpu.memory_space<vmem>>, vector<1x8x16x128xbf16>
    %92 = vector.shape_cast %91 : vector<1x8x16x128xbf16> to vector<8x16x128xbf16>
    %93 = vector.shape_cast %90 : vector<8x16x128xbf16> to vector<1x8x16x128xbf16>
    tpu.vector_store %arg9[%c0_72, %c0_73, %c0_74, %c0_75], %93 {strides = array<i32>} : memref<1x8x16x128xbf16, #tpu.memory_space<vmem>>, vector<1x8x16x128xbf16>,
    return
  }
  func.func @transform_0(%arg0: i32, %arg1: i32) -> (i32, i32, i32, i32) {
    %c0_i32 = arith.constant 0 : i32
    %c0_i32_0 = arith.constant 0 : i32
    %c0_i32_1 = arith.constant 0 : i32
    %c0_i32_2 = arith.constant 0 : i32
    return %arg0, %c0_i32, %c0_i32_0, %c0_i32_1 : i32, i32, i32, i32
  }
  func.func @transform_1(%arg0: i32, %arg1: i32) -> (i32, i32) {
    %c0_i32 = arith.constant 0 : i32
    %c0_i32_0 = arith.constant 0 : i32
    %c0_i32_1 = arith.constant 0 : i32
    return %c0_i32, %c0_i32_0 : i32, i32
  }
  func.func @transform_2(%arg0: i32, %arg1: i32) -> (i32, i32) {
    %c0_i32 = arith.constant 0 : i32
    %c0_i32_0 = arith.constant 0 : i32
    %c0_i32_1 = arith.constant 0 : i32
    return %c0_i32, %c0_i32_0 : i32, i32
  }
  func.func @transform_3(%arg0: i32, %arg1: i32) -> (i32, i32) {
    %c0_i32 = arith.constant 0 : i32
    %c0_i32_0 = arith.constant 0 : i32
    %c0_i32_1 = arith.constant 0 : i32
    return %c0_i32, %c0_i32_0 : i32, i32
  }
  func.func @transform_4(%arg0: i32, %arg1: i32) -> (i32, i32) {
    %c0_i32 = arith.constant 0 : i32
    %c0_i32_0 = arith.constant 0 : i32
    %c0_i32_1 = arith.constant 0 : i32
    return %c0_i32, %c0_i32_0 : i32, i32
  }
  func.func @transform_5(%arg0: i32, %arg1: i32) -> (i32, i32) {
    %c0_i32 = arith.constant 0 : i32
    %c0_i32_0 = arith.constant 0 : i32
    %c0_i32_1 = arith.constant 0 : i32
    return %c0_i32, %c0_i32_0 : i32, i32
  }
  func.func @transform_6(%arg0: i32, %arg1: i32) -> (i32, i32) {
    %c0_i32 = arith.constant 0 : i32
    %c0_i32_0 = arith.constant 0 : i32
    %c0_i32_1 = arith.constant 0 : i32
    return %c0_i32, %c0_i32_0 : i32, i32
  }
  func.func @transform_7(%arg0: i32, %arg1: i32) -> (i32, i32, i32, i32) {
    %c0_i32 = arith.constant 0 : i32
    %c0_i32_0 = arith.constant 0 : i32
    %c0_i32_1 = arith.constant 0 : i32
    return %arg0, %arg1, %c0_i32, %c0_i32_0 : i32, i32, i32, i32
  }
}

</mosaic_0001>

<bundles_post_ra>
// kernel: tpu_custom_call.1
= control target key start
LH: loop header
LB: loop body
LE: loop exit
PB: predicated region body
PF: predicated region fallthrough
CT: control target
= control target key end

     0   :  { %s4041_s0 = inlined_call_operand.vmem [shape: bf16[2,16,16,128], index: 0, kind: input, shape index: {}]   ;;  %s4042_s1 = inlined_call_operand.vmem [shape: bf16[128,32], index: 1, kind: input, shape index: {}]   ;;  %s4043_s2 = inlined_call_operand.hbm [shape: f32[1,32], index: 2, kind: input, shape index: {}]   ;;  %s4044_s3 = inlined_call_operand.vmem [shape: bf16[288,32], index: 3, kind: input, shape index: {}]   ;;  %s4045_s4 = inlined_call_operand.vmem [shape: f32[1,32], index: 4, kind: input, shape index: {}]   ;;  %s4046_s5 = inlined_call_operand.vmem [shape: bf16[32,128], index: 5, kind: input, shape index: {}]   ;;  %s4047_s6 = inlined_call_operand.vmem [shape: f32[1,128], index: 6, kind: input, shape index: {}]   ;;  %s4048_s7 = inlined_call_operand.hbm [shape: bf16[2,16,16,128], index: 7, kind: output, shape index: {}]  }
   0x1   :  { %4051 = sst [smem:[#allocation10_spill]] %s4043_s2 }
   0x2   :  { %12 = vsyncpa [#allocation4], 0 }
   0x3   :  { %13 = vsyncpa [#allocation5], 0 }
   0x4   :  { %15 = vsyncpa [#allocation5 + $0x1], 0  ;;  %s3240_s24 = smov 0   ;;  %s3242_s25 = smov 0  }
   0x5   :  { %s3244_s26 = smov 0   ;;  %s3246_s27 = smov 0  }
   0x6   :  { %s3248_s28 = smov 0   ;;  %s3250_s29 = smov 0  }
   0x7   :  { %s3252_s30 = smov 0   ;;  %s3254_s8 = smov 0  }
   0x8 LB: > { %s2501_s9 = sadd.s32 4294967295, %s3192_s8   ;;  %s2502_s10 = sadd.s32 4294967294, %s3192_s8   ;;  %s3192_s8 = sphi %s3254_s8, %s21_s8   ;;  %s3188_s30 = sphi %s3252_s30, %s4071_s30   ;;  %s3184_s29 = sphi %s3250_s29, %s4070_s29   ;;  %s3180_s28 = sphi %s3248_s28, %s4069_s28   ;;  %s3176_s27 = sphi %s3246_s27, %s4068_s27   ;;  %s3172_s26 = sphi %s3244_s26, %s4067_s26   ;;  %s3168_s25 = sphi %s3242_s25, %s4066_s25   ;;  %s3164_s24 = sphi %s3240_s24, %s4065_s24  }
   0x9   : > { %s30_s11 = sadd.s32 1, %s3184_s29  ;;  %s33_s12 = sadd.s32 1, %s3188_s30 }
   0xa   : > { %p31_p0 = scmp.ge.s32.totalorder %s30_s11, 2  ;;  %s194_s13 = sadd.s32 1, %s3172_s26 }
   0xb   : > { %p204_p1 = scmp.ne.s32.totalorder %s3172_s26, %s3168_s25  ;;  %p205_p2 = scmp.eq.s32.totalorder %s2501_s9, 3 }
   0xc   : > { %s4073_s11 = smov (%p31_p0, %s30_s11), 0  ;;  %s4075_s12 = smov (!%p31_p0, %s33_s12), %s3188_s30 }
   0xd   : > { %s190_s14 = ssub.s32 %s3184_s29, %s4073_s11  ;;  %p3292_p3 = por %p205_p2, %p204_p1 }
   0xe   : > { %p35_p4 = scmp.ge.s32.totalorder %s4075_s12, 2  ;;  %p210_p5 = scmp.ne.s32.totalorder %s3168_s25, %s3164_s24 }
   0xf   : > { %p211_p6 = scmp.eq.s32.totalorder %s2502_s10, 3  ;;  %p2503_p7 = scmp.ge.s32.totalorder %s3192_s8, 1 }
  0x10   : > { %s4077_s12 = smov (%p35_p4, %s4075_s12), 0  ;;  %p218_p9 = scmp.lt.s32.totalorder %s3192_s8, 5 }
  0x11   : > { %4053 = sst [smem:[#allocation9_spill]] %s4077_s12  ;;  %p3301_p8 = por %p211_p6, %p210_p5 }
  0x12   : > { %s189_s17 = ssub.s32 %s3188_s30, %s4077_s12  ;;  %p219_p10 = pnand %p2503_p7, %p218_p9 }
  0x13   : > { %s191_s18 = sor.u32 %s190_s14, %s189_s17  ;;  %p2948_p12 = scmp.eq.s32.totalorder %s2501_s9, 0 }
  0x14   : > { %p192_p11 = scmp.eq.s32.totalorder %s191_s18, 0  ;;  %p2940_p13 = pneg %p219_p10 }
  0x15   : > { %s4055_s2 = sld [smem:[#allocation10_spill]]  ;;  %s3194_s23 = smov [#allocation3]  }
  0x16   : > { %s3312_s22 = scalar_select %p192_p11, %s3172_s26, %s194_s13  }
  0x17   : > { %s235_s10 = sshll.u32 %s3194_s23, 4  ;;  %p2941_p0 = pnand %p2948_p12, %p2940_p13  ;;  %s236_s10 = int_to_ptr.vmem [resolvable:$true] %s235_s10 }
  0x18   : > { %268 = sbr.rel (%p219_p10) target bundleno = 762 (0x2fa), region = 48 }
  0x1b   : > { %s233_s21 = sshll.u32 %s4055_s2, 4  ;;  %s234_s21 = int_to_ptr.hbm [resolvable:$true] %s233_s21 }
  0x1c   : > { %2943 = dma.hbm_to_vmem [thread:$0]  (!%p2941_p0), %s234_s21, 16, %s236_s10, [#allocation4]  }
  0x1d   : > { %3143 = dma.done.wait (%p2948_p12), [#allocation4], 16  }
  0x1e   : > { %3145 = vsyncadd (%p2948_p12), [#allocation4], 4294967280  ;;  %v2702_v0 = vld [vmem:[%s4042_s1 + $0x38] sm:$0xff]  ;;  %v2701_v1 = vld [vmem:[%s4042_s1 + $0x30] sm:$0xff]  ;;  %s4049_s20 = sshll.u32 %s3176_s27, 3  ;;  %p301_p1 = scmp.lt.s32.totalorder %s3180_s28, 1 }
  0x1f   : > { %450 = vmatpush.bf16.msra.mxu0 %v2702_v0  ;;  %526 = vmatpush.bf16.msra.mxu1 %v2702_v0  ;;  %v2700_v2 = vld [vmem:[%s4042_s1 + $0x28] sm:$0xff]  ;;  %v2699_v3 = vld [vmem:[%s4042_s1 + $0x20] sm:$0xff]  ;;  %s2512_s10 = sadd.s32 4294967295, %s4049_s20  ;;  %v2698_v4 = vld [vmem:[%s4042_s1 + $0x18] sm:$0xff]  ;;  %s2704_s14 = sshll.u32 %s3176_s27, 6  ;;  %vm582_vm0 = vcmask 257024  }
  0x20   : > { %2918 = vmatpush.bf16.msra.mxu2 %v2702_v0  ;;  %2919 = vmatpush.bf16.msra.mxu3 %v2702_v0  ;;  %p327_p2 = scmp.gt.s32.totalorder %s2512_s10, 0  ;;  %v2697_v5 = vld [vmem:[%s4042_s1 + $0x10] sm:$0xff]  ;;  %v2696_v6 = vld [vmem:[%s4042_s1 + $0x8] sm:$0xff]  ;;  %v2695_v7 = vld [vmem:[%s4042_s1] sm:$0xff]  ;;  %s4056_s20 = sshll.u32 %s3176_s27, 3  ;;  %v3195_v18 = vmov 0  }
  0x21   : > { %s302_s9 = scalar_select %p301_p1, %s3180_s28, 1  ;;  %587 = vst.msk [vmem:[#allocation2 + $0xc] sm:$0xf] %vm582_vm0, %v3195_v18  ;;  %vm585_vm1 = vcmask 253952   ;;  %v3390_v19 = vld [vmem:[#allocation3] ss:$0 sm:$0xff] }
  0x22   : > { %s4079_s10 = smov (!%p327_p2, %s2512_s10), 0  ;;  %583 = vst.msk [vmem:[#allocation2] sm:$0xf] %vm582_vm0, %v3195_v18  ;;  %p542_p5 = scmp.gt.s32.totalorder %s3176_s27, 0  ;;  %vm640_vm2 = vsmask.f32 7938 }
  0x23   : > { %451 = vmatpush.bf16.msra.mxu0 %v2701_v1  ;;  %527 = vmatpush.bf16.msra.mxu1 %v2701_v1  ;;  %s2694_s19 = sshll.u32 %s302_s9, 7  ;;  %s2713_s13 = sshll.u32 %s4079_s10, 3  ;;  %584 = vst.msk [vmem:[#allocation2 + $0x4] sm:$0xf] %vm582_vm0, %v3195_v18  ;;  %vm3402_vm3 = vmand %vm582_vm0, %vm640_vm2  ;;  %vm616_vm4 = vsmask.f32 256 }
  0x24   : > { %2920 = vmatpush.bf16.msra.mxu2 %v2701_v1  ;;  %2921 = vmatpush.bf16.msra.mxu3 %v2701_v1  ;;  %s3344_s2 = scalar_lea.vmem %s4041_s0, %s2694_s19  ;;  %s329_s10 = sadd.s32 8, %s4056_s20  ;;  %588 = vst.msk [vmem:[#allocation2 + $0x10] sm:$0xf] %vm582_vm0, %v3195_v18  ;;  %vm617_vm5 = vsmask.f32 4368  ;;  %v2734_v55 = vld [vmem:[%s4044_s3 + $0x88] sm:$0xff]  ;;  %vm3419_vm7 = vmand %vm585_vm1, %vm616_vm4 }
  0x25   : > { %s3350_s12 = scalar_lea.vmem %s3344_s2, %s2704_s14  ;;  %s517_s21 = scalar_lea.vmem %s3344_s2, %s2713_s13  ;;  %590 = vst.msk [vmem:[#allocation2 + $0x18] sm:$0xf] %vm582_vm0, %v3195_v18  ;;  %vm3413_vm6 = vmor %vm616_vm4, %vm617_vm5  ;;  %vm1212_vm8 = vcmask 1046528   ;;  %vm1075_vm9 = vsmask.f32 7424  ;;  %vm1733_vm10 = vcmask 261120  }
  0x26   : > { %v2705_v8 = vld [vmem:[%s3350_s12] sm:$0xff]  ;;  %v2708_v10 = vld [vmem:[%s3350_s12 + $0x18] sm:$0xff]  ;;  %v2710_v11 = vld [vmem:[%s3350_s12 + $0x28] sm:$0xff]  ;;  %p330_p4 = scmp.lt.s32.totalorder %s329_s10, 15  ;;  %591 = vst.msk [vmem:[#allocation2 + $0x1c] sm:$0xf] %vm582_vm0, %v3195_v18 }
  0x27   : > { %452 = vmatpush.bf16.msra.mxu0 %v2700_v2  ;;  %528 = vmatpush.bf16.msra.mxu1 %v2700_v2  ;;  %v2714_v9 = vld [vmem:[%s517_s21] sm:$0xff]  ;;  %v2706_v12 = vld [vmem:[%s3350_s12 + $0x8] sm:$0xff]  ;;  %v2711_v14 = vld [vmem:[%s3350_s12 + $0x30] sm:$0xff]  ;;  %593 = vst.msk [vmem:[#allocation2 + $0x24] sm:$0xf] %vm582_vm0, %v3195_v18  ;;  %s3196_s21 = smov 96  }
  0x28   : > { %2922 = vmatpush.bf16.msra.mxu2 %v2700_v2  ;;  %2923 = vmatpush.bf16.msra.mxu3 %v2700_v2  ;;  %v2709_v13 = vld [vmem:[%s3350_s12 + $0x20] sm:$0xff]  ;;  %s4081_s10 = smov (!%p330_p4, %s329_s10), 15  ;;  %v2707_v15 = vld [vmem:[%s3350_s12 + $0x10] sm:$0xff]  ;;  %v2712_v16 = vld [vmem:[%s3350_s12 + $0x38] sm:$0xff]  ;;  %594 = vst.msk [vmem:[#allocation2 + $0x28] sm:$0xf] %vm582_vm0, %v3195_v18 }
  0x29   : > { %s2715_s19 = sshll.u32 %s4081_s10, 3  ;;  %596 = vst.msk [vmem:[#allocation2 + $0x30] sm:$0xf] %vm582_vm0, %v3195_v18  ;;  %v828_v37 = vld [vmem:[#allocation2 + $0xc] sm:$0xf]  ;;  %s3197_s20 = smov 32  }
  0x2a   : > { %s550_s23 = scalar_lea.vmem %s3344_s2, %s2715_s19  ;;  %597 = vst.msk [vmem:[#allocation2 + $0x34] sm:$0xf] %vm582_vm0, %v3195_v18  ;;  %v642_v44 = vld [vmem:[#allocation2] sm:$0xf]  ;;  %s3198_s10 = smov 64   ;;  %vm1750_vm11 = vcmask 523264  }
  0x2b   : > { %453 = vmatpush.bf16.msra.mxu0 %v2699_v3  ;;  %529 = vmatpush.bf16.msra.mxu1 %v2699_v3  ;;  %v2716_v17 = vld [vmem:[%s550_s23] sm:$0xff]  ;;  %599 = vst.msk [vmem:[#allocation2 + $0x3c] sm:$0xf] %vm582_vm0, %v3195_v18  ;;  %s543_s2 = scalar_select %p542_p5, 1, 0  ;;  %vm1767_vm12 = vcmask 785408  }
  0x2c   : > { %2924 = vmatpush.bf16.msra.mxu2 %v2699_v3  ;;  %2925 = vmatpush.bf16.msra.mxu3 %v2699_v3  ;;  %600 = vst.msk [vmem:[#allocation2 + $0x40] sm:$0xf] %vm582_vm0, %v3195_v18  ;;  %s2690_s13 = sshll.u32 %s3180_s28, 5 }
  0x2d   : > { %602 = vst.msk [vmem:[#allocation2 + $0x48] sm:$0xf] %vm582_vm0, %v3195_v18  ;;  %s544_s14 = scvt.s32.f32 %s543_s2  ;;  %s575_s2 = sadd.s32 1, %s3176_s27 }
  0x2e   : > { %603 = vst.msk [vmem:[#allocation2 + $0x4c] sm:$0xf] %vm582_vm0, %v3195_v18  ;;  %p3592_p6 = scmp.lt.s32.totalorder %s575_s2, 2 }
  0x2f   : > { %454 = vmatpush.bf16.msra.mxu0 %v2698_v4  ;;  %530 = vmatpush.bf16.msra.mxu1 %v2698_v4  ;;  %605 = vst.msk [vmem:[#allocation2 + $0x54] sm:$0xf] %vm582_vm0, %v3195_v18  ;;  %v545_v24 = vstv %s544_s14  ;;  %s298_s14 = sand.u32 1, %s3168_s25  }
  0x30   : > { %2926 = vmatpush.bf16.msra.mxu2 %v2698_v4  ;;  %2927 = vmatpush.bf16.msra.mxu3 %v2698_v4  ;;  %606 = vst.msk [vmem:[#allocation2 + $0x58] sm:$0xf] %vm582_vm0, %v3195_v18  ;;  %s577_s19 = scalar_select %p3592_p6, 1, 0 }
  0x31   : > { %608 = vst.msk [vmem:[#allocation2 + $0x60] sm:$0xf] %vm582_vm0, %v3195_v18  ;;  %s2508_s17 = sshll.u32 %s298_s14, 6  ;;  %s2389_s2 = scalar_lea.sflag [#allocation5], %s298_s14 }
  0x32   : > { %609 = vst.msk [vmem:[#allocation2 + $0x64] sm:$0xf] %vm582_vm0, %v3195_v18  ;;  %s3629_s23 = scvt.s32.f32 %s577_s19 }
  0x33   : > { %455 = vmatpush.bf16.msra.mxu0 %v2697_v5  ;;  %531 = vmatpush.bf16.msra.mxu1 %v2697_v5  ;;  %611 = vst.msk [vmem:[#allocation2 + $0x6c] sm:$0xf] %vm582_vm0, %v3195_v18 }
  0x34   : > { %2928 = vmatpush.bf16.msra.mxu2 %v2697_v5  ;;  %2929 = vmatpush.bf16.msra.mxu3 %v2697_v5  ;;  %612 = vst.msk [vmem:[#allocation2 + $0x70] sm:$0xf] %vm582_vm0, %v3195_v18 }
  0x35   : > { %589 = vst.msk [vmem:[#allocation2 + $0x14] sm:$0x1] %vm585_vm1, %v3195_v18 }
  0x36   : > { %586 = vst.msk [vmem:[#allocation2 + $0x8] sm:$0x1] %vm585_vm1, %v3195_v18 }
  0x37   : > { %456 = vmatpush.bf16.msra.mxu0 %v2696_v6  ;;  %532 = vmatpush.bf16.msra.mxu1 %v2696_v6  ;;  %592 = vst.msk [vmem:[#allocation2 + $0x20] sm:$0x1] %vm585_vm1, %v3195_v18 }
  0x38   : > { %2930 = vmatpush.bf16.msra.mxu2 %v2696_v6  ;;  %2931 = vmatpush.bf16.msra.mxu3 %v2696_v6  ;;  %595 = vst.msk [vmem:[#allocation2 + $0x2c] sm:$0x1] %vm585_vm1, %v3195_v18 }
  0x39   : > { %598 = vst.msk [vmem:[#allocation2 + $0x38] sm:$0x1] %vm585_vm1, %v3195_v18 }
  0x3a   : > { %601 = vst.msk [vmem:[#allocation2 + $0x44] sm:$0x1] %vm585_vm1, %v3195_v18 }
  0x3b   : > { %457 = vmatpush.bf16.msra.mxu0 %v2695_v7  ;;  %533 = vmatpush.bf16.msra.mxu1 %v2695_v7  ;;  %604 = vst.msk [vmem:[#allocation2 + $0x50] sm:$0x1] %vm585_vm1, %v3195_v18 }
  0x3c   : > { %2932 = vmatpush.bf16.msra.mxu2 %v2695_v7  ;;  %2933 = vmatpush.bf16.msra.mxu3 %v2695_v7  ;;  %607 = vst.msk [vmem:[#allocation2 + $0x5c] sm:$0x1] %vm585_vm1, %v3195_v18  ;;  %v832_v62 = vld [vmem:[#allocation2 + $0x14] sm:$0x1] }
  0x3d   : > { %610 = vst.msk [vmem:[#allocation2 + $0x68] sm:$0x1] %vm585_vm1, %v3195_v18 }
  0x3e   : > { %458 = vmatmul.bf16.vlgmr.msra.gmra.mxu0 %v2705_v8  ;;  %534 = vmatmul.bf16.vlgmr.msra.gmra.mxu1 %v2714_v9  ;;  %613 = vst.msk [vmem:[#allocation2 + $0x74] sm:$0x1] %vm585_vm1, %v3195_v18 }
  0x3f   : > { %473 = vmatmul.bf16.vlgmr.msra.gmra.mxu2 %v2708_v10  ;;  %483 = vmatmul.bf16.vlgmr.msra.gmra.mxu3 %v2710_v11 }
  0x40   : > { %559 = vmatpush.bf16.msrb.mxu2 %v2702_v0 }
  0x44   : > { %560 = vmatpush.bf16.msrb.mxu2 %v2701_v1 }
  0x48   : > { %561 = vmatpush.bf16.msrb.mxu2 %v2700_v2 }
  0x4c   : > { %562 = vmatpush.bf16.msrb.mxu2 %v2699_v3 }
  0x4e   : > { %463 = vmatmul.bf16.gmra.mxu0 %v2706_v12 }
  0x4f   : > { %478 = vmatmul.bf16.gmra.mxu2 %v2709_v13  ;;  %488 = vmatmul.bf16.gmra.mxu3 %v2711_v14  ;;  %v2733_v13 = vld [vmem:[%s4044_s3 + $0x80] sm:$0xff] }
  0x50   : > { %563 = vmatpush.bf16.msrb.mxu2 %v2698_v4 }
  0x54   : > { %564 = vmatpush.bf16.msrb.mxu2 %v2697_v5 }
  0x58   : > { %565 = vmatpush.bf16.msrb.mxu2 %v2696_v6 }
  0x5c   : > { %566 = vmatpush.bf16.msrb.mxu2 %v2695_v7  ;;  %v648_v7 = vld [vmem:[#allocation2 + $0x8] sm:$0x1] }
  0x5e   : > { %468 = vmatmul.bf16.gmra.mxu0 %v2707_v15 }
  0x5f   : > { %493 = vmatmul.bf16.gmra.mxu3 %v2712_v16  ;;  %567 = vmatmul.bf16.vlgmr.msrb.gmra.mxu2 %v2716_v17 }
  0x60   : > { %2132 = vmatpush.bf16.msra.mxu2 %v2734_v55  ;;  %v839_v55 = vld [vmem:[#allocation2 + $0x20] sm:$0x1] }
  0x64   : > { %2133 = vmatpush.bf16.msra.mxu2 %v2733_v13 }
  0xbb   : > { %v459_v20 = vpop.f32.mrf.mxu0  ;;  %v535_v21 = vpop.f32.mrf.mxu1 }
  0xbc   : > { %v460_v22 = vadd.f32 %v3390_v19, %v459_v20  ;;  %v536_v23 = vadd.f32 %v3390_v19, %v535_v21 }
  0xbe   : > { %v499_v25 = vmax.f32 %v460_v22, 0.0  ;;  %v540_v26 = vmax.f32 %v536_v23, 0.0 }
  0xc0   : > { %v651_v27 = vpack.c.bf16 %v499_v25, %v499_v25  ;;  %v546_v28 = vmul.f32 %v545_v24, %v540_v26 }
  0xc2   : > { %v668_v29 = vshrl.u32 %v651_v27, 16  ;;  %v671_v30 = vshll.u32 %v651_v27, 16  ;;  %v614_v31 = vpack.c.bf16 %v546_v28, %v546_v28  ;;  %v474_v49 = vpop.f32.mrf.mxu2 }
  0xc3   : > { %v461_v32 = vpop.f32.mrf.mxu0  ;;  %v537_v33 = vpop.f32.mrf.mxu1  ;;  %v475_v12 = vadd.f32 %v3390_v19, %v474_v49 }
  0xc4   : > { %v670_v34 = vrot.slane %v668_v29, 7  ;;  %v620_v35 = vshrl.u32 %v614_v31, 16  ;;  %v462_v36 = vadd.f32 %v3390_v19, %v461_v32  ;;  %v538_v38 = vadd.f32 %v3390_v19, %v537_v33 }
  0xc5   : > { %v623_v41 = vshll.u32 %v614_v31, 16  ;;  %v505_v21 = vmax.f32 %v475_v12, 0.0 }
  0xc6   : > { %v673_v39 = vor.u32 %v671_v30, %v670_v34  ;;  %v622_v40 = vrot.slane %v620_v35, 7  ;;  %v500_v42 = vmax.f32 %v462_v36, 0.0  ;;  %v541_v45 = vmax.f32 %v538_v38, 0.0 }
  0xc7   : > { %v674_v56 = vrot.slane %v670_v34, 4  ;;  %v657_v26 = vpack.c.bf16 %v505_v21, %v505_v21 }
  0xc8   : > { %v829_v46 = vsel %vm3402_vm3, %v673_v39, %v828_v37  ;;  %v625_v47 = vor.u32 %v623_v41, %v622_v40  ;;  %v652_v48 = vpack.c.bf16 %v500_v42, %v500_v42  ;;  %v547_v50 = vmul.f32 %v545_v24, %v541_v45  ;;  %v835_v24 = vld [vmem:[#allocation2 + $0x18] sm:$0xf]  ;;  %v849_v42 = vld [vmem:[#allocation2 + $0x30] sm:$0xf] }
  0xc9   : > { %830 = vst [vmem:[#allocation2 + $0xc] sm:$0xf] %v829_v46  ;;  %v626_v9 = vrot.slane %v622_v40, 4  ;;  %v719_v31 = vshrl.u32 %v657_v26, 16  ;;  %v722_v32 = vshll.u32 %v657_v26, 16 }
  0xca   : > { %v643_v51 = vsel %vm3402_vm3, %v625_v47, %v642_v44  ;;  %v676_v52 = vshrl.u32 %v652_v48, 16  ;;  %v615_v53 = vpack.c.bf16 %v547_v50, %v547_v50  ;;  %v679_v59 = vshll.u32 %v652_v48, 16  ;;  %v476_v16 = vpop.f32.mrf.mxu2 }
  0xcb   : > { %644 = vst [vmem:[#allocation2] sm:$0xf] %v643_v51  ;;  %v464_v54 = vpop.f32.mrf.mxu0  ;;  %v477_v22 = vadd.f32 %v3390_v19, %v476_v16  ;;  %v3443_v37 = vrot.slane %v719_v31, 7  ;;  %v853_v31 = vld [vmem:[#allocation2 + $0x38] sm:$0x1] }
  0xcc   : > { %v678_v58 = vrot.slane %v676_v52, 7  ;;  %v465_v60 = vadd.f32 %v3390_v19, %v464_v54  ;;  %v628_v63 = vshrl.u32 %v615_v53, 16  ;;  %v631_v4 = vshll.u32 %v615_v53, 16 }
  0xcd   : > { %v506_v28 = vmax.f32 %v477_v22, 0.0  ;;  %v724_v46 = vor.u32 %v722_v32, %v3443_v37  ;;  %v842_v32 = vld [vmem:[#allocation2 + $0x24] sm:$0xf] }
  0xce   : > { %v681_v0 = vor.u32 %v679_v59, %v678_v58  ;;  %v683_v1 = vrot.slane %v678_v58, 4  ;;  %v501_v2 = vmax.f32 %v465_v60, 0.0  ;;  %v630_v3 = vrot.slane %v628_v63, 7 }
  0xcf   : > { %v658_v39 = vpack.c.bf16 %v506_v28, %v506_v28  ;;  %v850_v58 = vsel %vm3402_vm3, %v724_v46, %v849_v42 }
  0xd0   : > { %v682_v5 = vsel %vm3413_vm6, %v674_v56, %v681_v0  ;;  %v833_v6 = vsel %vm3419_vm7, %v683_v1, %v832_v62  ;;  %v653_v8 = vpack.c.bf16 %v501_v2, %v501_v2  ;;  %v633_v10 = vor.u32 %v631_v4, %v630_v3  ;;  %v3029_v27 = vld [vmem:[#allocation2 + $0xc] sm:$0xe]  ;;  %851 = vst [vmem:[#allocation2 + $0x30] sm:$0xf] %v850_v58 }
  0xd1   : > { %831 = vst.msk [vmem:[#allocation2 + $0x10] sm:$0xf] %vm582_vm0, %v682_v5  ;;  %v635_v11 = vrot.slane %v630_v3, 4  ;;  %v3446_v49 = vld [vmem:[#allocation2 + $0xc] sm:$0xe]  ;;  %v727_v59 = vshrl.u32 %v658_v39, 16 }
  0xd2   : > { %834 = vst [vmem:[#allocation2 + $0x14] sm:$0x1] %v833_v6  ;;  %v685_v14 = vshrl.u32 %v653_v8, 16  ;;  %v688_v15 = vshll.u32 %v653_v8, 16  ;;  %v634_v17 = vsel %vm3413_vm6, %v626_v9, %v633_v10  ;;  %v730_v60 = vshll.u32 %v658_v39, 16 }
  0xd3   : > { %v649_v18 = vsel %vm3419_vm7, %v635_v11, %v648_v7  ;;  %v466_v20 = vpop.f32.mrf.mxu0  ;;  %645 = vst.msk [vmem:[#allocation2 + $0x4] sm:$0xf] %vm582_vm0, %v634_v17  ;;  %v725_v11 = vrot.slane %v3443_v37, 4  ;;  %v2869_v12 = vld [vmem:[#allocation2] sm:$0xe]  ;;  %v729_v21 = vrot.slane %v727_v59, 7 }
  0xd4   : > { %v687_v23 = vrot.slane %v685_v14, 7  ;;  %v467_v25 = vadd.f32 %v3390_v19, %v466_v20  ;;  %650 = vst [vmem:[#allocation2 + $0x8] sm:$0x1] %v649_v18 }
  0xd6   : > { %v690_v29 = vor.u32 %v688_v15, %v687_v23  ;;  %v502_v30 = vmax.f32 %v467_v25, 0.0  ;;  %v691_v40 = vrot.slane %v687_v23, 4 }
  0xd8   : > { %v836_v33 = vsel %vm3402_vm3, %v690_v29, %v835_v24  ;;  %v654_v34 = vpack.c.bf16 %v502_v30, %v502_v30  ;;  %v3441_v35 = vld [vmem:[#allocation2 + $0xc] sm:$0xff]   ;;  %v732_v29 = vor.u32 %v730_v60, %v729_v21  ;;  %v734_v30 = vrot.slane %v729_v21, 4 }
  0xd9   : > { %v3028_v36 = vld [vmem:[#allocation2 + $0xc] sm:$0xf0]  ;;  %837 = vst [vmem:[#allocation2 + $0x18] sm:$0xf] %v836_v33  ;;  %v962_v38 = vld [vmem:[#allocation2 + $0x14] sm:$0x1]  ;;  %1293 = vrot.lane.b32.xlu1 %v3441_v35, %s3196_s21 }
  0xda   : > { %v693_v41 = vshrl.u32 %v654_v34, 16  ;;  %v2739_v45 = vld [vmem:[#allocation2] sm:$0xff]   ;;  %v1317_v47 = vunpack.c.l.b16 %v962_v38  ;;  %v3030_v48 = vor.u32 %v3029_v27, %v3028_v36  ;;  %v696_v51 = vshll.u32 %v654_v34, 16  ;;  %v3455_v6 = vld [vmem:[#allocation2 + $0xc] sm:$0xff]   ;;  %v931_v13 = vld [vmem:[#allocation2 + $0x14] sm:$0x1]  ;;  %v479_v38 = vpop.f32.mrf.mxu2 }
  0xdb   : > { %v469_v44 = vpop.f32.mrf.mxu0  ;;  %v930_v53 = vld [vmem:[#allocation2 + $0x8] sm:$0x1]  ;;  %v1079_v54 = vshll.u32 %v2739_v45, 16  ;;  %v2868_v1 = vld [vmem:[#allocation2] sm:$0xf0]  ;;  %v1077_v14 = vshrl.u32 %v2739_v45, 16  ;;  %v1060_v26 = vunpack.c.l.b16 %v931_v13  ;;  %v733_v42 = vsel %vm3413_vm6, %v725_v11, %v732_v29 }
  0xdc   : > { %v695_v50 = vrot.slane %v693_v41, 7  ;;  %v470_v52 = vadd.f32 %v3390_v19, %v469_v44  ;;  %v1059_v56 = vunpack.c.l.b16 %v930_v53  ;;  %v3453_v4 = vpack.c.b16 %v1317_v47, %v1317_v47  ;;  %v3150_v7 = vld [vmem:[#allocation2 + $0xc] sm:$0xf0]  ;;  %852 = vst.msk [vmem:[#allocation2 + $0x34] sm:$0xf] %vm582_vm0, %v733_v42 }
  0xdd   : > { %v1081_v3 = vrot.slane %v1079_v54, 1  ;;  %v1453_v5 = vrot.slane %v3030_v48, 1  ;;  %v2870_v17 = vor.u32 %v2869_v12, %v2868_v1  ;;  %v3470_v36 = vpack.c.b16 %v1060_v26, %v1060_v26  ;;  %v484_v48 = vpop.f32.mrf.mxu3 }
  0xde   : > { %v698_v62 = vor.u32 %v696_v51, %v695_v50  ;;  %v700_v63 = vrot.slane %v695_v50, 4  ;;  %v503_v0 = vmax.f32 %v470_v52, 0.0  ;;  %v1067_v2 = vpack.c.b16 %v1059_v56, %v1059_v56 }
  0xdf   : > { %v1454_v16 = vrot.slane %v3453_v4, 1  ;;  %v1082_v23 = vor.u32 %v1081_v3, %v1077_v14  ;;  %v3152_v37 = vor.u32 %v3446_v49, %v3150_v7  ;;  %v1213_v41 = vrot.slane %v2870_v17, 1 }
  0xe0   : > { %v699_v8 = vsel %vm3413_vm6, %v691_v40, %v698_v62  ;;  %v840_v9 = vsel %vm3419_vm7, %v700_v63, %v839_v55  ;;  %v655_v10 = vpack.c.bf16 %v503_v0, %v503_v0  ;;  %v1084_v15 = vshll.u32 %v1067_v2, 16  ;;  %v2893_v47 = vld [vmem:[#allocation2 + $0x18] sm:$0xe] }
  0xe1   : > { %838 = vst.msk [vmem:[#allocation2 + $0x1c] sm:$0xf] %vm582_vm0, %v699_v8  ;;  %v1455_v25 = vsel %vm1212_vm8, %v1453_v5, %v1454_v16  ;;  %v1214_v34 = vrot.slane %v1067_v2, 1  ;;  %v854_v44 = vsel %vm3419_vm7, %v734_v30, %v853_v31  ;;  %v1216_v45 = vrot.slane %v3152_v37, 1  ;;  %v2881_v30 = vld [vmem:[#allocation2 + $0x18] sm:$0xe] }
  0xe2   : > { %841 = vst [vmem:[#allocation2 + $0x20] sm:$0x1] %v840_v9  ;;  %v702_v18 = vshrl.u32 %v655_v10, 16  ;;  %v705_v20 = vshll.u32 %v655_v10, 16  ;;  %v1086_v24 = vrot.slane %v1084_v15, 1  ;;  %1477 = vrot.lane.b32.xlu1 %v1455_v25, %s3197_s20  ;;  %v1217_v46 = vrot.slane %v3470_v36, 1  ;;  %v481_v25 = vpop.f32.mrf.mxu2 }
  0xe3   : > { %v471_v22 = vpop.f32.mrf.mxu0  ;;  %855 = vst [vmem:[#allocation2 + $0x38] sm:$0x1] %v854_v44  ;;  %v480_v53 = vadd.f32 %v3390_v19, %v479_v38  ;;  %v1215_v55 = vsel %vm1212_vm8, %v1213_v41, %v1214_v34  ;;  %v1091_v2 = vshll.u32 %v3455_v6, 16  ;;  %v1096_v3 = vshll.u32 %v3470_v36, 16  ;;  %v846_v10 = vld [vmem:[#allocation2 + $0x2c] sm:$0x1] }
  0xe4   : > { %v3465_v27 = vrot.slane %v702_v18, 7  ;;  %v472_v28 = vadd.f32 %v3390_v19, %v471_v22  ;;  %v1087_v33 = vsel %vm1075_vm9, %v1082_v23, %v1086_v24  ;;  %v1218_v1 = vsel %vm1212_vm8, %v1216_v45, %v1217_v46  ;;  %v856_v44 = vld [vmem:[#allocation2 + $0x3c] sm:$0xf] }
  0xe5   : > { %1172 = vrot.lane.b32.xlu0 %v1087_v33, %s3197_s20  ;;  %v507_v9 = vmax.f32 %v480_v53, 0.0  ;;  %v1093_v13 = vrot.slane %v1091_v2, 1  ;;  %v1089_v22 = vshrl.u32 %v3455_v6, 16  ;;  %v486_v37 = vpop.f32.mrf.mxu3  ;;  %v1098_v41 = vrot.slane %v1096_v3, 1 }
  0xe6   : > { %v707_v39 = vor.u32 %v705_v20, %v3465_v27  ;;  %v504_v40 = vmax.f32 %v472_v28, 0.0  ;;  %v708_v58 = vrot.slane %v3465_v27, 4  ;;  %v487_v53 = vadd.f32 %v3390_v19, %v486_v37 }
  0xe7   : > { %v659_v23 = vpack.c.bf16 %v507_v9, %v507_v9 }
  0xe8   : > { %v843_v49 = vsel %vm3402_vm3, %v707_v39, %v842_v32  ;;  %v656_v50 = vpack.c.bf16 %v504_v40, %v504_v40  ;;  %v3483_v51 = vld [vmem:[#allocation2 + $0x18] sm:$0xff]   ;;  %v1094_v32 = vor.u32 %v1093_v13, %v1089_v22  ;;  %v482_v39 = vadd.f32 %v3390_v19, %v481_v25 }
  0xe9   : > { %v2892_v52 = vld [vmem:[#allocation2 + $0x18] sm:$0xf0]  ;;  %844 = vst [vmem:[#allocation2 + $0x24] sm:$0xf] %v843_v49  ;;  %1533 = vrot.lane.b32.xlu2 %v3483_v51, %s3198_s10  ;;  %v1576_v54 = vshll.u32 %v3483_v51, 16  ;;  %v1574_v11 = vshrl.u32 %v3483_v51, 16  ;;  %v485_v40 = vadd.f32 %v3390_v19, %v484_v48 }
  0xea   : > { %v995_v56 = vld [vmem:[#allocation2 + $0x20] sm:$0x1]  ;;  %v710_v59 = vshrl.u32 %v656_v50, 16  ;;  %v2894_v62 = vor.u32 %v2893_v47, %v2892_v52  ;;  %v713_v7 = vshll.u32 %v656_v50, 16  ;;  %1239 = vrot.lane.b32.xlu1 %v1218_v1, %s3198_s10  ;;  %v2880_v20 = vld [vmem:[#allocation2 + $0x18] sm:$0xf0] }
  0xeb   : > { %v1557_v60 = vunpack.c.l.b16 %v995_v56  ;;  %v963_v63 = vld [vmem:[#allocation2 + $0x20] sm:$0x1]  ;;  %v1578_v0 = vrot.slane %v1576_v54, 1  ;;  %v736_v33 = vshrl.u32 %v659_v23, 16  ;;  %v739_v34 = vshll.u32 %v659_v23, 16 }
  0xec   : > { %v712_v5 = vrot.slane %v710_v59, 7  ;;  %v1709_v12 = vrot.slane %v2894_v62, 1  ;;  %v1318_v14 = vunpack.c.l.b16 %v963_v63  ;;  %v932_v31 = vld [vmem:[#allocation2 + $0x20] sm:$0x1]  ;;  %v2882_v36 = vor.u32 %v2881_v30, %v2880_v20  ;;  %v3515_v52 = vld [vmem:[#allocation2 + $0x18] sm:$0xf0] }
  0xed   : > { %v1565_v8 = vpack.c.b16 %v1557_v60, %v1557_v60  ;;  %1237 = vrot.lane.b32.xlu0 %v1215_v55, %s3198_s10  ;;  %v3497_v21 = vor.u32 %v1578_v0, %v1574_v11  ;;  %v738_v42 = vrot.slane %v736_v33, 7  ;;  %v1061_v46 = vunpack.c.l.b16 %v932_v31  ;;  %v2872_v60 = vld [vmem:[#allocation2 + $0x18] sm:$0xe]  ;;  %v863_v20 = vld [vmem:[#allocation2 + $0x48] sm:$0xf] }
  0xee   : > { %v715_v15 = vor.u32 %v713_v7, %v712_v5  ;;  %v717_v16 = vrot.slane %v712_v5, 4  ;;  %v3500_v24 = vpack.c.b16 %v1318_v14, %v1318_v14  ;;  %v508_v47 = vmax.f32 %v482_v39, 0.0 }
  0xef   : > { %v1710_v17 = vrot.slane %v1565_v8, 1  ;;  %v1581_v18 = vshll.u32 %v1565_v8, 16  ;;  %v509_v50 = vmax.f32 %v485_v40, 0.0  ;;  %v1099_v54 = vsel %vm1075_vm9, %v1094_v32, %v1098_v41  ;;  %v867_v40 = vld [vmem:[#allocation2 + $0x50] sm:$0x1] }
  0xf0   : > { %v716_v26 = vsel %vm3413_vm6, %v708_v58, %v715_v15  ;;  %v847_v27 = vsel %vm3419_vm7, %v717_v16, %v846_v10  ;;  %v1457_v45 = vrot.slane %v3500_v24, 1  ;;  %v3032_v49 = vld [vmem:[#allocation2 + $0x24] sm:$0xe]  ;;  %v741_v55 = vor.u32 %v739_v34, %v738_v42 }
  0xf1   : > { %v1711_v28 = vsel %vm1212_vm8, %v1709_v12, %v1710_v17  ;;  %v1583_v29 = vrot.slane %v1581_v18, 1  ;;  %845 = vst.msk [vmem:[#allocation2 + $0x28] sm:$0xf] %vm582_vm0, %v716_v26  ;;  %v1456_v56 = vrot.slane %v2882_v36, 1  ;;  %v660_v48 = vpack.c.bf16 %v508_v47, %v508_v47  ;;  %v860_v17 = vld [vmem:[#allocation2 + $0x44] sm:$0x1] }
  0xf2   : > { %2663 = vmatmul.msk.bf16.vlgmr.msra.gmra.mxu2 %vm1733_vm10, %v1711_v28  ;;  %848 = vst [vmem:[#allocation2 + $0x2c] sm:$0x1] %v847_v27  ;;  %v661_v58 = vpack.c.bf16 %v509_v50, %v509_v50  ;;  %v3520_v59 = vpack.c.b16 %v1061_v46, %v1061_v46  ;;  %v510_v62 = vmax.f32 %v487_v53, 0.0  ;;  %v857_v63 = vsel %vm3402_vm3, %v741_v55, %v856_v44  ;;  %v3154_v41 = vld [vmem:[#allocation2 + $0x24] sm:$0xe] }
  0xf3   : > { %v1584_v38 = vsel %vm1075_vm9, %v3497_v21, %v1583_v29  ;;  %v1458_v0 = vsel %vm1212_vm8, %v1456_v56, %v1457_v45  ;;  %v2873_v1 = vor.u32 %v2872_v60, %v3515_v52  ;;  %858 = vst [vmem:[#allocation2 + $0x3c] sm:$0xf] %v857_v63  ;;  %v744_v5 = vshrl.u32 %v660_v48, 16  ;;  %v997_v53 = vld [vmem:[#allocation2 + $0x38] sm:$0x1] }
  0xf4   : > { %1669 = vrot.lane.b32.xlu2 %v1584_v38, %s3196_s21  ;;  %v747_v7 = vshll.u32 %v660_v48, 16  ;;  %v753_v8 = vshrl.u32 %v661_v58, 16  ;;  %v662_v9 = vpack.c.bf16 %v510_v62, %v510_v62  ;;  %v742_v10 = vrot.slane %v738_v42, 4  ;;  %v489_v42 = vpop.f32.mrf.mxu3 }
  0xf5   : > { %1174 = vrot.lane.b32.xlu0 %v1099_v54, %s3197_s20  ;;  %v756_v12 = vshll.u32 %v661_v58, 16  ;;  %v746_v13 = vrot.slane %v744_v5, 7  ;;  %v1108_v16 = vshll.u32 %v3520_v59, 16  ;;  %v1220_v22 = vrot.slane %v3520_v59, 1  ;;  %v3543_v58 = vld [vmem:[#allocation2 + $0x30] sm:$0xff]  }
  0xf6   : > { %v755_v15 = vrot.slane %v753_v8, 7  ;;  %v761_v23 = vshrl.u32 %v662_v9, 16  ;;  %v764_v47 = vshll.u32 %v662_v9, 16  ;;  %v1219_v59 = vrot.slane %v2873_v1, 1 }
  0xf7   : > { %v749_v25 = vor.u32 %v747_v7, %v746_v13  ;;  %v751_v26 = vrot.slane %v746_v13, 4  ;;  %v1110_v50 = vrot.slane %v1108_v16, 1  ;;  %v1600_v1 = vshll.u32 %v3543_v58, 16  ;;  %v3035_v16 = vld [vmem:[#allocation2 + $0x24] sm:$0xe] }
  0xf8   : > { %v981_v2 = vld [vmem:[#allocation2 + $0x24] sm:$0xff]   ;;  %v758_v28 = vor.u32 %v756_v12, %v755_v15  ;;  %v759_v33 = vrot.slane %v755_v15, 4  ;;  %v763_v46 = vrot.slane %v761_v23, 7  ;;  %v1221_v5 = vsel %vm1212_vm8, %v1219_v59, %v1220_v22  ;;  %v2896_v12 = vld [vmem:[#allocation2 + $0x30] sm:$0xe] }
  0xf9   : > { %v3031_v3 = vld [vmem:[#allocation2 + $0x24] sm:$0xf0]  ;;  %v996_v11 = vld [vmem:[#allocation2 + $0x2c] sm:$0x1]  ;;  %v1588_v31 = vshll.u32 %v981_v2, 16  ;;  %1535 = vrot.lane.b32.xlu1 %v981_v2, %s3198_s10  ;;  %v1586_v34 = vshrl.u32 %v981_v2, 16  ;;  %v750_v36 = vsel %vm3413_vm6, %v742_v10, %v749_v25  ;;  %v861_v37 = vsel %vm3419_vm7, %v751_v26, %v860_v17 }
  0xfa   : > { %v1558_v14 = vunpack.c.l.b16 %v996_v11  ;;  %v3033_v18 = vor.u32 %v3032_v49, %v3031_v3  ;;  %v3530_v29 = vld [vmem:[#allocation2 + $0x24] sm:$0xff]   ;;  %v864_v39 = vsel %vm3402_vm3, %v758_v28, %v863_v20  ;;  %859 = vst.msk [vmem:[#allocation2 + $0x40] sm:$0xf] %vm582_vm0, %v750_v36  ;;  %v766_v56 = vor.u32 %v764_v47, %v763_v46  ;;  %v933_v7 = vld [vmem:[#allocation2 + $0x2c] sm:$0x1] }
  0xfb   : > { %v3153_v30 = vld [vmem:[#allocation2 + $0x24] sm:$0xf0]  ;;  %v1590_v44 = vrot.slane %v1588_v31, 1  ;;  %862 = vst [vmem:[#allocation2 + $0x44] sm:$0x1] %v861_v37  ;;  %v768_v48 = vrot.slane %v763_v46, 4  ;;  %v1559_v3 = vunpack.c.l.b16 %v997_v53  ;;  %v1111_v8 = vsel %vm1075_vm9, %v3497_v21, %v1110_v50 }
  0xfc   : > { %1295 = vrot.lane.b32.xlu2 %v3483_v51, %s3196_s21  ;;  %v1566_v27 = vpack.c.b16 %v1558_v14, %v1558_v14  ;;  %v1712_v32 = vrot.slane %v3033_v18, 1  ;;  %v964_v51 = vld [vmem:[#allocation2 + $0x2c] sm:$0x1]  ;;  %865 = vst [vmem:[#allocation2 + $0x48] sm:$0xf] %v864_v39  ;;  %v3545_v60 = vld [vmem:[#allocation2 + $0x24] sm:$0xff]   ;;  %v3155_v10 = vor.u32 %v3154_v41, %v3153_v30  ;;  %v1062_v15 = vunpack.c.l.b16 %v933_v7  ;;  %v491_v22 = vpop.f32.mrf.mxu3 }
  0xfd   : > { %1479 = vrot.lane.b32.xlu0 %v1458_v0, %s3197_s20  ;;  %v1319_v52 = vunpack.c.l.b16 %v964_v51  ;;  %v1591_v54 = vor.u32 %v1590_v44, %v1586_v34  ;;  %v3034_v62 = vld [vmem:[#allocation2 + $0x24] sm:$0xf0]  ;;  %v767_v0 = vsel %vm3413_vm6, %v759_v33, %v766_v56  ;;  %v868_v2 = vsel %vm3419_vm7, %v768_v48, %v867_v40  ;;  %v2895_v11 = vld [vmem:[#allocation2 + $0x30] sm:$0xf0]  ;;  %v965_v28 = vld [vmem:[#allocation2 + $0x38] sm:$0x1] }
  0xfe   : > { %v1713_v38 = vrot.slane %v1566_v27, 1  ;;  %v1593_v45 = vshll.u32 %v1566_v27, 16  ;;  %866 = vst.msk [vmem:[#allocation2 + $0x4c] sm:$0xf] %vm582_vm0, %v767_v0  ;;  %v1567_v13 = vpack.c.b16 %v1559_v3, %v1559_v3  ;;  %v1598_v14 = vshrl.u32 %v3543_v58, 16 }
  0xff   : > { %869 = vst [vmem:[#allocation2 + $0x50] sm:$0x1] %v868_v2  ;;  %v3559_v9 = vpack.c.b16 %v1319_v52, %v1319_v52  ;;  %v1602_v17 = vrot.slane %v1600_v1, 1  ;;  %v2897_v18 = vor.u32 %v2896_v12, %v2895_v11  ;;  %v490_v20 = vadd.f32 %v3390_v19, %v489_v42  ;;  %v2883_v41 = vld [vmem:[#allocation2 + $0x30] sm:$0xf0] }
 0x100   : > { %v1714_v49 = vsel %vm1212_vm8, %v1712_v32, %v1713_v38  ;;  %v1595_v55 = vrot.slane %v1593_v45, 1  ;;  %v1459_v23 = vrot.slane %v3155_v10, 1  ;;  %v1605_v26 = vshll.u32 %v1567_v13, 16  ;;  %v3038_v47 = vld [vmem:[#allocation2 + $0x3c] sm:$0xe] }
 0x101   : > { %1241 = vrot.lane.b32.xlu1 %v1221_v5, %s3198_s10  ;;  %v1460_v25 = vrot.slane %v3559_v9, 1  ;;  %v1115_v27 = vshll.u32 %v3545_v60, 16  ;;  %v1070_v30 = vpack.c.b16 %v1062_v15, %v1062_v15  ;;  %v511_v31 = vmax.f32 %v490_v20, 0.0  ;;  %v3566_v32 = vld [vmem:[#allocation2 + $0x3c] sm:$0xff]   ;;  %v934_v3 = vld [vmem:[#allocation2 + $0x38] sm:$0x1] }
 0x102   : > { %2664 = vmatmul.msk.bf16.gmra.mxu2 %vm1733_vm10, %v1714_v49  ;;  %v1596_v63 = vsel %vm1075_vm9, %v1591_v54, %v1595_v55  ;;  %v3568_v33 = vld [vmem:[#allocation2 + $0x3c] sm:$0xf0]  ;;  %v3572_v34 = vor.u32 %v1602_v17, %v1598_v14  ;;  %v1715_v51 = vrot.slane %v2897_v18, 1  ;;  %v1716_v36 = vrot.slane %v1567_v13, 1  ;;  %v998_v46 = vld [vmem:[#allocation2 + $0x44] sm:$0x1] }
 0x103   : > { %v3036_v37 = vor.u32 %v3035_v16, %v3034_v62  ;;  %v1461_v38 = vsel %vm1212_vm8, %v1459_v23, %v1460_v25  ;;  %v1117_v39 = vrot.slane %v1115_v27, 1  ;;  %v663_v40 = vpack.c.bf16 %v511_v31, %v511_v31  ;;  %v2884_v54 = vld [vmem:[#allocation2 + $0x30] sm:$0xe]  ;;  %v2724_v5 = vld [vmem:[%s4044_s3 + $0x38] sm:$0xff]  ;;  %v870_v1 = vld [vmem:[#allocation2 + $0x54] sm:$0xf] }
 0x104   : > { %1671 = vrot.lane.b32.xlu2 %v1596_v63, %s3196_s21  ;;  %v1320_v42 = vunpack.c.l.b16 %v965_v28  ;;  %v1607_v44 = vrot.slane %v1605_v26, 1  ;;  %v492_v45 = vadd.f32 %v3390_v19, %v491_v22  ;;  %v1113_v49 = vshrl.u32 %v3545_v60, 16  ;;  %v494_v62 = vpop.f32.mrf.mxu3  ;;  %2028 = vmatpush.bf16.msrb.mxu3 %v2724_v5  ;;  %v3156_v5 = vld [vmem:[#allocation2 + $0x3c] sm:$0xf0] }
 0x105   : > { %1176 = vrot.lane.b32.xlu0 %v1111_v8, %s3197_s20  ;;  %v1120_v50 = vshll.u32 %v1070_v30, 16  ;;  %v770_v52 = vshrl.u32 %v663_v40, 16  ;;  %v773_v53 = vshll.u32 %v663_v40, 16  ;;  %v1717_v55 = vsel %vm1212_vm8, %v1715_v51, %v1716_v36  ;;  %v874_v36 = vld [vmem:[#allocation2 + $0x5c] sm:$0x1] }
 0x106   : > { %v1222_v56 = vrot.slane %v3036_v37, 1  ;;  %v1223_v48 = vrot.slane %v1070_v30, 1  ;;  %v512_v59 = vmax.f32 %v492_v45, 0.0  ;;  %v1118_v63 = vor.u32 %v1117_v39, %v1113_v49  ;;  %v2723_v30 = vld [vmem:[%s4044_s3 + $0x30] sm:$0xff] }
 0x107   : > { %v772_v0 = vrot.slane %v770_v52, 7  ;;  %v1560_v2 = vunpack.c.l.b16 %v998_v46  ;;  %v2885_v7 = vor.u32 %v2884_v54, %v2883_v41  ;;  %v1608_v10 = vsel %vm1075_vm9, %v3572_v34, %v1607_v44  ;;  %v2874_v40 = vld [vmem:[#allocation2 + $0x30] sm:$0xf0]  ;;  %v2875_v49 = vld [vmem:[#allocation2 + $0x30] sm:$0xe] }
 0x108   : > { %v664_v8 = vpack.c.bf16 %v512_v59, %v512_v59  ;;  %v1122_v11 = vrot.slane %v1120_v50, 1  ;;  %v3588_v13 = vpack.c.b16 %v1320_v42, %v1320_v42  ;;  %v1224_v14 = vsel %vm1212_vm8, %v1222_v56, %v1223_v48  ;;  %v568_v42 = vpop.f32.mrf.mxu2  ;;  %2029 = vmatpush.bf16.msrb.mxu3 %v2723_v30  ;;  %v3620_v56 = vld [vmem:[#allocation2 + $0x3c] sm:$0xe]  ;;  %v936_v43 = vld [vmem:[#allocation2 + $0x50] sm:$0x1] }
 0x109   : > { %1537 = vrot.lane.b32.xlu1 %v3543_v58, %s3198_s10  ;;  %v775_v12 = vor.u32 %v773_v53, %v772_v0  ;;  %v1063_v17 = vunpack.c.l.b16 %v934_v3  ;;  %v1568_v22 = vpack.c.b16 %v1560_v2, %v1560_v2  ;;  %v3039_v23 = vor.u32 %v3038_v47, %v3568_v33  ;;  %v2732_v33 = vld [vmem:[%s4044_s3 + $0x78] sm:$0xff] }
 0x10a   : > { %v778_v15 = vshrl.u32 %v664_v8, 16  ;;  %v781_v16 = vshll.u32 %v664_v8, 16  ;;  %v1123_v18 = vsel %vm1075_vm9, %v1118_v63, %v1122_v11  ;;  %v776_v25 = vrot.slane %v772_v0, 4  ;;  %2077 = vmatpush.bf16.msrb.mxu1 %v2732_v33  ;;  %v3627_v3 = vld [vmem:[#allocation2 + $0x3c] sm:$0xff]  }
 0x10b   : > { %v871_v20 = vsel %vm3402_vm3, %v775_v12, %v870_v1  ;;  %v1612_v26 = vshll.u32 %v3566_v32, 16  ;;  %v495_v28 = vadd.f32 %v3390_v19, %v494_v62  ;;  %v1462_v31 = vrot.slane %v2885_v7, 1  ;;  %v877_v12 = vld [vmem:[#allocation2 + $0x60] sm:$0xf] }
 0x10c   : > { %1297 = vrot.lane.b32.xlu2 %v3530_v29, %s3196_s21  ;;  %872 = vst [vmem:[#allocation2 + $0x54] sm:$0xf] %v871_v20  ;;  %v780_v27 = vrot.slane %v778_v15, 7  ;;  %v1463_v51 = vrot.slane %v3588_v13, 1  ;;  %v3611_v39 = vpack.c.b16 %v1063_v17, %v1063_v17  ;;  %v1718_v44 = vrot.slane %v3039_v23, 1  ;;  %v496_v48 = vpop.f32.mrf.mxu3  ;;  %v2722_v15 = vld [vmem:[%s4044_s3 + $0x28] sm:$0xff] }
 0x10d   : > { %1481 = vrot.lane.b32.xlu0 %v1461_v38, %s3197_s20  ;;  %v513_v41 = vmax.f32 %v495_v28, 0.0  ;;  %v1719_v45 = vrot.slane %v1568_v22, 1  ;;  %v1610_v46 = vshrl.u32 %v3566_v32, 16  ;;  %v1617_v47 = vshll.u32 %v1568_v22, 16  ;;  %v3646_v20 = vld [vmem:[#allocation2 + $0x3c] sm:$0xff]   ;;  %2030 = vmatpush.bf16.msrb.mxu3 %v2722_v15 }
 0x10e   : > { %v783_v37 = vor.u32 %v781_v16, %v780_v27  ;;  %v785_v38 = vrot.slane %v780_v27, 4  ;;  %v1614_v53 = vrot.slane %v1612_v26, 1  ;;  %v1464_v59 = vsel %vm1212_vm8, %v1462_v31, %v1463_v51  ;;  %v3648_v22 = vld [vmem:[#allocation2 + $0x3c] sm:$0xf0]  ;;  %v935_v51 = vld [vmem:[#allocation2 + $0x44] sm:$0x1] }
 0x10f   : > { %v665_v54 = vpack.c.bf16 %v513_v41, %v513_v41  ;;  %v1132_v62 = vshll.u32 %v3611_v39, 16  ;;  %v2876_v63 = vor.u32 %v2875_v49, %v2874_v40  ;;  %v1720_v1 = vsel %vm1212_vm8, %v1718_v44, %v1719_v45  ;;  %v3662_v40 = vld [vmem:[#allocation2 + $0x48] sm:$0xff]  }
 0x110   : > { %v784_v50 = vsel %vm3413_vm6, %v776_v25, %v783_v37  ;;  %v875_v52 = vsel %vm3419_vm7, %v785_v38, %v874_v36  ;;  %v497_v8 = vadd.f32 %v3390_v19, %v496_v48  ;;  %v1226_v16 = vrot.slane %v3611_v39, 1  ;;  %v2721_v36 = vld [vmem:[%s4044_s3 + $0x20] sm:$0xff]  ;;  %v570_v38 = vpop.f32.mrf.mxu2 }
 0x111   : > { %1243 = vrot.lane.b32.xlu1 %v1224_v14, %s3198_s10  ;;  %873 = vst.msk [vmem:[#allocation2 + $0x58] sm:$0xf] %vm582_vm0, %v784_v50  ;;  %v787_v0 = vshrl.u32 %v665_v54, 16  ;;  %v790_v2 = vshll.u32 %v665_v54, 16  ;;  %v569_v14 = vadd.f32 %v3390_v19, %v568_v42  ;;  %v1134_v23 = vrot.slane %v1132_v62, 1  ;;  %2031 = vmatpush.bf16.msrb.mxu3 %v2721_v36 }
 0x112   : > { %2665 = vmatmul.msk.bf16.gmra.mxu2 %vm1733_vm10, %v1717_v55  ;;  %v966_v55 = vld [vmem:[#allocation2 + $0x44] sm:$0x1]  ;;  %876 = vst [vmem:[#allocation2 + $0x5c] sm:$0x1] %v875_v52  ;;  %v514_v17 = vmax.f32 %v497_v8, 0.0  ;;  %v1225_v25 = vrot.slane %v2876_v63, 1  ;;  %v579_v26 = vstv %s3629_s23  ;;  %v3158_v28 = vor.u32 %v3620_v56, %v3156_v5 }
 0x113   : > { %v1321_v7 = vunpack.c.l.b16 %v966_v55  ;;  %v3636_v11 = vrot.slane %v787_v0, 7  ;;  %v573_v31 = vmax.f32 %v569_v14, 0.0  ;;  %v1135_v45 = vsel %vm1075_vm9, %v3572_v34, %v1134_v23  ;;  %v3670_v50 = vld [vmem:[#allocation2 + $0x3c] sm:$0xe]  ;;  %v2730_v52 = vld [vmem:[%s4044_s3 + $0x68] sm:$0xff] }
 0x114   : > { %1673 = vrot.lane.b32.xlu2 %v1608_v10, %s3196_s21  ;;  %v1619_v10 = vrot.slane %v1617_v47, 1  ;;  %v666_v30 = vpack.c.bf16 %v514_v17, %v514_v17  ;;  %v881_v47 = vld [vmem:[#allocation2 + $0x68] sm:$0x1]  ;;  %v1064_v49 = vunpack.c.l.b16 %v935_v51  ;;  %v2898_v55 = vld [vmem:[#allocation2 + $0x48] sm:$0xf0]  ;;  %v1465_v63 = vrot.slane %v3158_v28, 1 }
 0x115   : > { %1178 = vrot.lane.b32.xlu0 %v1123_v18, %s3197_s20  ;;  %v999_v18 = vld [vmem:[#allocation2 + $0x50] sm:$0x1]  ;;  %v792_v19 = vor.u32 %v790_v2, %v3636_v11  ;;  %v3653_v27 = vpack.c.b16 %v1321_v7, %v1321_v7  ;;  %v580_v44 = vmul.f32 %v579_v26, %v573_v31  ;;  %v2899_v56 = vld [vmem:[#allocation2 + $0x48] sm:$0xe]  ;;  %v1624_v2 = vshll.u32 %v3662_v40, 16  ;;  %v2720_v7 = vld [vmem:[%s4044_s3 + $0x18] sm:$0xff] }
 0x116   : > { %v1561_v37 = vunpack.c.l.b16 %v999_v18  ;;  %v795_v41 = vshrl.u32 %v666_v30, 16  ;;  %v798_v42 = vshll.u32 %v666_v30, 16  ;;  %v3686_v14 = vpack.c.b16 %v1064_v49, %v1064_v49  ;;  %2032 = vmatpush.bf16.msrb.mxu3 %v2720_v7  ;;  %v907_v18 = vld [vmem:[#allocation2 + $0x6c] sm:$0xf]  ;;  %v2728_v30 = vld [vmem:[%s4044_s3 + $0x58] sm:$0xff] }
 0x117   : > { %v878_v33 = vsel %vm3402_vm3, %v792_v19, %v877_v12  ;;  %v884_v48 = vpack.c.bf16 %v580_v44, %v580_v44  ;;  %v1466_v0 = vrot.slane %v3653_v27, 1  ;;  %v2900_v12 = vor.u32 %v2899_v56, %v2898_v55  ;;  %v967_v49 = vld [vmem:[#allocation2 + $0x50] sm:$0x1] }
 0x118   : > { %879 = vst [vmem:[#allocation2 + $0x60] sm:$0xf] %v878_v33  ;;  %v797_v54 = vrot.slane %v795_v41, 7  ;;  %v1569_v5 = vpack.c.b16 %v1561_v37, %v1561_v37  ;;  %v1139_v15 = vshll.u32 %v3646_v20, 16  ;;  %v1626_v19 = vrot.slane %v1624_v2, 1  ;;  %v3709_v41 = vld [vmem:[#allocation2 + $0x54] sm:$0xff]  }
 0x119   : > { %1539 = vrot.lane.b32.xlu1 %v3566_v32, %s3198_s10  ;;  %v2731_v32 = vld [vmem:[%s4044_s3 + $0x70] sm:$0xff]  ;;  %v1467_v31 = vsel %vm1212_vm8, %v1465_v63, %v1466_v0  ;;  %v1721_v33 = vrot.slane %v2900_v12, 1 }
 0x11a   : > { %2078 = vmatpush.bf16.msrb.mxu1 %v2731_v32  ;;  %v800_v8 = vor.u32 %v798_v42, %v797_v54  ;;  %v1629_v28 = vshll.u32 %v1569_v5, 16  ;;  %v1722_v37 = vrot.slane %v1569_v5, 1  ;;  %v3711_v42 = vld [vmem:[#allocation2 + $0x54] sm:$0xf0]  ;;  %v1141_v44 = vrot.slane %v1139_v15, 1 }
 0x11c   : > { %1299 = vrot.lane.b32.xlu2 %v3543_v58, %s3196_s21  ;;  %v1615_v58 = vor.u32 %v1614_v53, %v1610_v46  ;;  %v1227_v46 = vsel %vm1212_vm8, %v1225_v25, %v1226_v16  ;;  %v793_v53 = vrot.slane %v3636_v11, 4  ;;  %v890_v11 = vshll.u32 %v884_v48, 16 }
 0x11d   : > { %1483 = vrot.lane.b32.xlu0 %v1464_v59, %s3197_s20  ;;  %v3024_v59 = vld [vmem:[#allocation3] ss:$0 sm:$0xff]  ;;  %v1622_v25 = vshrl.u32 %v3662_v40, 16  ;;  %v1723_v55 = vsel %vm1212_vm8, %v1721_v33, %v1722_v37  ;;  %v2878_v37 = vld [vmem:[#allocation2 + $0x48] sm:$0xe] }
 0x11e   : > { %v1620_v39 = vsel %vm1075_vm9, %v1615_v58, %v1619_v10  ;;  %v571_v62 = vadd.f32 %v3024_v59, %v570_v38  ;;  %2079 = vmatpush.bf16.msrb.mxu1 %v2730_v52  ;;  %v802_v58 = vrot.slane %v797_v54, 4  ;;  %v887_v10 = vshrl.u32 %v884_v48, 16  ;;  %v2727_v54 = vld [vmem:[%s4044_s3 + $0x50] sm:$0xff] }
 0x11f   : > { %v801_v32 = vsel %vm3413_vm6, %v793_v53, %v800_v8  ;;  %v1137_v38 = vshrl.u32 %v3646_v20, 16  ;;  %v1229_v48 = vrot.slane %v3686_v14, 1  ;;  %v911_v59 = vld [vmem:[#allocation2 + $0x74] sm:$0x1]  ;;  %v2886_v8 = vld [vmem:[#allocation2 + $0x48] sm:$0xf0] }
 0x120   : > { %v882_v16 = vsel %vm3419_vm7, %v802_v58, %v881_v47  ;;  %v3693_v17 = vrot.slane %v887_v10, 7  ;;  %v574_v23 = vmax.f32 %v571_v62, 0.0  ;;  %880 = vst.msk [vmem:[#allocation2 + $0x64] sm:$0xf] %vm582_vm0, %v801_v32  ;;  %v3719_v47 = vor.u32 %v1626_v19, %v1622_v25  ;;  %v1000_v62 = vld [vmem:[#allocation2 + $0x5c] sm:$0x1] }
 0x121   : > { %1245 = vrot.lane.b32.xlu1 %v1227_v46, %s3198_s10  ;;  %883 = vst [vmem:[#allocation2 + $0x68] sm:$0x1] %v882_v16  ;;  %v1142_v0 = vor.u32 %v1141_v44, %v1137_v38  ;;  %v2887_v58 = vld [vmem:[#allocation2 + $0x48] sm:$0xe]  ;;  %v1322_v10 = vunpack.c.l.b16 %v967_v49  ;;  %v1562_v15 = vunpack.c.l.b16 %v1000_v62  ;;  %v1065_v16 = vunpack.c.l.b16 %v936_v43  ;;  %v2725_v38 = vld [vmem:[%s4044_s3 + $0x40] sm:$0xff]  ;;  %v3767_v43 = vld [vmem:[#allocation2 + $0x54] sm:$0xff]  }
 0x122   : > { %2666 = vmatmul.msk.bf16.gmra.mxu2 %vm1733_vm10, %v1720_v1  ;;  %v2729_v1 = vld [vmem:[%s4044_s3 + $0x60] sm:$0xff]  ;;  %v892_v51 = vor.u32 %v890_v11, %v3693_v17  ;;  %v581_v36 = vmul.f32 %v579_v26, %v574_v23  ;;  %v893_v63 = vrot.slane %v3693_v17, 4  ;;  %v2726_v11 = vld [vmem:[%s4044_s3 + $0x48] sm:$0xff]  ;;  %v2888_v25 = vor.u32 %v2887_v58, %v2886_v8 }
 0x123   : > { %2080 = vmatpush.bf16.msrb.mxu1 %v2729_v1  ;;  %v3044_v1 = vld [vmem:[#allocation2 + $0x54] sm:$0xe]  ;;  %v2718_v19 = vld [vmem:[%s4044_s3 + $0x8] sm:$0xff]  ;;  %v1570_v57 = vpack.c.b16 %v1562_v15, %v1562_v15  ;;  %v1073_v61 = vpack.c.b16 %v1065_v16, %v1065_v16 }
 0x124   : > { %1675 = vrot.lane.b32.xlu2 %v1620_v39, %s3196_s21  ;;  %v3042_v39 = vor.u32 %v3670_v50, %v3648_v22  ;;  %v908_v26 = vsel %vm3402_vm3, %v892_v51, %v907_v18  ;;  %v885_v46 = vpack.c.bf16 %v581_v36, %v581_v36  ;;  %v1631_v22 = vrot.slane %v1629_v28, 1  ;;  %v2719_v50 = vld [vmem:[%s4044_s3 + $0x10] sm:$0xff]  ;;  %v2877_v51 = vld [vmem:[#allocation2 + $0x48] sm:$0xf0] }
 0x125   : > { %1180 = vrot.lane.b32.xlu0 %v1135_v45, %s3197_s20  ;;  %v1144_v45 = vshll.u32 %v3686_v14, 16  ;;  %909 = vst [vmem:[#allocation2 + $0x6c] sm:$0xf] %v908_v26  ;;  %2033 = vmatpush.bf16.msrb.mxu3 %v2719_v50  ;;  %v3749_v28 = vpack.c.b16 %v1322_v10, %v1322_v10  ;;  %v1468_v36 = vrot.slane %v2888_v25, 1  ;;  %v1634_v26 = vshrl.u32 %v3709_v41, 16 }
 0x126   : > { %v895_v52 = vshrl.u32 %v885_v46, 16  ;;  %v898_v53 = vshll.u32 %v885_v46, 16  ;;  %v1228_v56 = vrot.slane %v3042_v39, 1  ;;  %v1632_v7 = vsel %vm1075_vm9, %v3719_v47, %v1631_v22  ;;  %v2717_v39 = vld [vmem:[%s4044_s3] sm:$0xff] }
 0x127   : > { %2081 = vmatpush.bf16.msrb.mxu1 %v2728_v30  ;;  %v1146_v2 = vrot.slane %v1144_v45, 1  ;;  %v1636_v30 = vshll.u32 %v3709_v41, 16  ;;  %v1469_v33 = vrot.slane %v3749_v28, 1  ;;  %v1641_v45 = vshll.u32 %v1570_v57, 16  ;;  %v3776_v58 = vld [vmem:[#allocation2 + $0x60] sm:$0xff]  }
 0x128   : > { %v897_v5 = vrot.slane %v895_v52, 7  ;;  %v1230_v32 = vsel %vm1212_vm8, %v1228_v56, %v1229_v48  ;;  %v1725_v46 = vrot.slane %v1570_v57, 1  ;;  %v1156_v22 = vshll.u32 %v1073_v61, 16  ;;  %v968_v52 = vld [vmem:[#allocation2 + $0x5c] sm:$0x1] }
 0x129   : > { %1541 = vrot.lane.b32.xlu1 %v3662_v40, %s3198_s10  ;;  %v1147_v17 = vsel %vm1075_vm9, %v1142_v0, %v1146_v2  ;;  %2034 = vmatpush.bf16.msrb.mxu3 %v2718_v19  ;;  %v1638_v44 = vrot.slane %v1636_v30, 1  ;;  %v2879_v49 = vor.u32 %v2878_v37, %v2877_v51  ;;  %v1470_v50 = vsel %vm1212_vm8, %v1468_v36, %v1469_v33  ;;  %v3770_v0 = vld [vmem:[#allocation2 + $0x54] sm:$0xff]   ;;  %v2901_v10 = vld [vmem:[#allocation2 + $0x60] sm:$0xf0] }
 0x12a   : > { %v900_v12 = vor.u32 %v898_v53, %v897_v5  ;;  %v902_v14 = vrot.slane %v897_v5, 4  ;;  %v3160_v53 = vld [vmem:[#allocation2 + $0x54] sm:$0xe]  ;;  %v1643_v56 = vrot.slane %v1641_v45, 1  ;;  %v3159_v2 = vld [vmem:[#allocation2 + $0x54] sm:$0xf0] }
 0x12b   : > { %2082 = vmatpush.bf16.msrb.mxu1 %v2727_v54  ;;  %v3046_v54 = vld [vmem:[#allocation2 + $0x54] sm:$0xf0]  ;;  %v1231_v62 = vrot.slane %v2879_v49, 1  ;;  %v1001_v5 = vld [vmem:[#allocation2 + $0x68] sm:$0x1]  ;;  %v3161_v16 = vor.u32 %v3160_v53, %v3159_v2  ;;  %v1336_v30 = vshll.u32 %v3441_v35, 16 }
 0x12c   : > { %1301 = vrot.lane.b32.xlu2 %v3627_v3, %s3196_s21  ;;  %v901_v18 = vsel %vm3413_vm6, %v893_v63, %v900_v12  ;;  %v912_v23 = vsel %vm3419_vm7, %v902_v14, %v911_v59  ;;  %v1158_v59 = vrot.slane %v1156_v22, 1  ;;  %v1232_v63 = vrot.slane %v1073_v61, 1  ;;  %v969_v2 = vld [vmem:[#allocation2 + $0x68] sm:$0x1] }
 0x12d   : > { %1485 = vrot.lane.b32.xlu0 %v1467_v31, %s3197_s20  ;;  %910 = vst.msk [vmem:[#allocation2 + $0x70] sm:$0xf] %vm582_vm0, %v901_v18  ;;  %v3045_v31 = vor.u32 %v3044_v1, %v3711_v42  ;;  %2035 = vmatpush.bf16.msrb.mxu3 %v2717_v39  ;;  %v937_v1 = vld [vmem:[#allocation2 + $0x5c] sm:$0x1]  ;;  %v1563_v12 = vunpack.c.l.b16 %v1001_v5  ;;  %v3047_v18 = vld [vmem:[#allocation2 + $0x54] sm:$0xe] }
 0x12e   : > { %913 = vst [vmem:[#allocation2 + $0x74] sm:$0x1] %v912_v23  ;;  %v1159_v14 = vsel %vm1075_vm9, %v3719_v47, %v1158_v59  ;;  %v1233_v15 = vsel %vm1212_vm8, %v1231_v62, %v1232_v63  ;;  %v1648_v23 = vshll.u32 %v3776_v58, 16  ;;  %v1471_v57 = vrot.slane %v3161_v16, 1 }
 0x12f   : > { %2083 = vmatpush.bf16.msrb.mxu1 %v2726_v11  ;;  %v1724_v42 = vrot.slane %v3045_v31, 1  ;;  %v2902_v11 = vld [vmem:[#allocation2 + $0x60] sm:$0xe]  ;;  %v1571_v19 = vpack.c.b16 %v1563_v12, %v1563_v12  ;;  %v1163_v51 = vshll.u32 %v3767_v43, 16  ;;  %v1646_v36 = vshrl.u32 %v3776_v58, 16 }
 0x130   : > { %v2903_v25 = vor.u32 %v2902_v11, %v2901_v10  ;;  %v1650_v33 = vrot.slane %v1648_v23, 1  ;;  %v1161_v22 = vshrl.u32 %v3767_v43, 16  ;;  %v1338_v53 = vrot.slane %v1336_v30, 1  ;;  %v2889_v11 = vld [vmem:[#allocation2 + $0x60] sm:$0xf0] }
 0x131   : > { %1247 = vrot.lane.b32.xlu1 %v1230_v32, %s3198_s10  ;;  %v1726_v48 = vsel %vm1212_vm8, %v1724_v42, %v1725_v46  ;;  %v1653_v39 = vshll.u32 %v1571_v19, 16  ;;  %v1165_v49 = vrot.slane %v1163_v51, 1  ;;  %v1341_v59 = vshll.u32 %v3453_v4, 16  ;;  %v2890_v12 = vld [vmem:[#allocation2 + $0x60] sm:$0xe] }
 0x132   : > { %2667 = vmatmul.msk.bf16.gmra.mxu2 %vm1733_vm10, %v1723_v55  ;;  %v1639_v55 = vor.u32 %v1638_v44, %v1634_v26  ;;  %v1727_v37 = vrot.slane %v2903_v25, 1  ;;  %v3048_v26 = vor.u32 %v3047_v18, %v3046_v54  ;;  %v2891_v23 = vor.u32 %v2890_v12, %v2889_v11 }
 0x133   : > { %2084 = vmatpush.bf16.msrb.mxu1 %v2725_v38  ;;  %v1728_v38 = vrot.slane %v1571_v19, 1  ;;  %v1382_v25 = vshrl.u32 %v3627_v3, 16  ;;  %v1353_v11 = vshll.u32 %v3500_v24, 16  ;;  %v1408_v24 = vshll.u32 %v3770_v0, 16 }
 0x134   : > { %1677 = vrot.lane.b32.xlu2 %v1632_v7, %s3196_s21  ;;  %v1644_v8 = vsel %vm1075_vm9, %v1639_v55, %v1643_v56  ;;  %v3793_v44 = vld [vmem:[#allocation2 + $0x6c] sm:$0xff]   ;;  %v3801_v55 = vor.u32 %v1650_v33, %v1646_v36  ;;  %v1234_v62 = vrot.slane %v3048_v26, 1 }
 0x135   : > { %1182 = vrot.lane.b32.xlu0 %v1147_v17, %s3197_s20  ;;  %v1066_v17 = vunpack.c.l.b16 %v937_v1  ;;  %v3049_v45 = vld [vmem:[#allocation2 + $0x6c] sm:$0xf0]  ;;  %v1729_v54 = vsel %vm1212_vm8, %v1727_v37, %v1728_v38  ;;  %v1002_v5 = vld [vmem:[#allocation2 + $0x74] sm:$0x1]  ;;  %v3050_v1 = vld [vmem:[#allocation2 + $0x6c] sm:$0xe] }
 0x136   : > { %v1564_v16 = vunpack.c.l.b16 %v1002_v5  ;;  %v1660_v51 = vshll.u32 %v3793_v44, 16  ;;  %v3051_v38 = vor.u32 %v3050_v1, %v3049_v45 }
 0x137   : > { %v1074_v61 = vpack.c.b16 %v1066_v17, %v1066_v17  ;;  %v1343_v17 = vrot.slane %v1341_v59, 1 }
 0x138   : > { %v1572_v36 = vpack.c.b16 %v1564_v16, %v1564_v16  ;;  %v1730_v45 = vrot.slane %v3051_v38, 1  ;;  %v1358_v38 = vshrl.u32 %v3530_v29, 16 }
 0x139   : > { %1543 = vrot.lane.b32.xlu1 %v3709_v41, %s3198_s10  ;;  %v1323_v41 = vunpack.c.l.b16 %v968_v52  ;;  %v1334_v52 = vshrl.u32 %v3441_v35, 16  ;;  %v1235_v63 = vrot.slane %v1074_v61, 1 }
 0x13b   : > { %v3783_v32 = vpack.c.b16 %v1323_v41, %v1323_v41  ;;  %v1166_v41 = vor.u32 %v1165_v49, %v1161_v22  ;;  %v1339_v10 = vor.u32 %v1338_v53, %v1334_v52  ;;  %v1236_v4 = vsel %vm1212_vm8, %v1234_v62, %v1235_v63  ;;  %v3025_v63 = vld [vmem:[#allocation2] sm:$0xff]  }
 0x13c   : > { %1303 = vrot.lane.b32.xlu2 %v3662_v40, %s3196_s21  ;;  %v1658_v49 = vshrl.u32 %v3793_v44, 16  ;;  %v1665_v52 = vshll.u32 %v1572_v36, 16 }
 0x13d   : > { %1487 = vrot.lane.b32.xlu0 %v1470_v50, %s3197_s20  ;;  %v1472_v31 = vrot.slane %v3783_v32, 1  ;;  %v1168_v50 = vshll.u32 %v1074_v61, 16 }
 0x13e   : > { %v1667_v62 = vrot.slane %v1665_v52, 1 }
 0x13f   : > { %v1473_v46 = vsel %vm1212_vm8, %v1471_v57, %v1472_v31  ;;  %v1170_v35 = vrot.slane %v1168_v50, 1  ;;  %v1344_v57 = vsel %vm1075_vm9, %v1339_v10, %v1343_v17  ;;  %v1662_v50 = vrot.slane %v1660_v51, 1 }
 0x141   : > { %1249 = vrot.lane.b32.xlu1 %v1233_v15, %s3198_s10  ;;  %v1324_v15 = vunpack.c.l.b16 %v969_v2  ;;  %v1171_v18 = vsel %vm1075_vm9, %v1166_v41, %v1170_v35  ;;  %v1663_v59 = vor.u32 %v1662_v50, %v1658_v49 }
 0x142   : > { %2668 = vmatmul.msk.bf16.gmra.mxu2 %vm1733_vm10, %v1726_v48  ;;  %v1655_v48 = vrot.slane %v1653_v39, 1  ;;  %v1474_v39 = vrot.slane %v2891_v23, 1 }
 0x143   : > { %v3773_v7 = vpop.permute.xlu2 %1533  ;;  %v3818_v61 = vpack.c.b16 %v1324_v15, %v1324_v15  ;;  %v1668_v35 = vsel %vm1075_vm9, %v1663_v59, %v1667_v62  ;;  %v1377_v59 = vshll.u32 %v3588_v13, 16 }
 0x144   : > { %1679 = vrot.lane.b32.xlu2 %v1644_v8, %s3196_s21  ;;  %v1384_v8 = vshll.u32 %v3627_v3, 16 }
 0x145   : > { %1184 = vrot.lane.b32.xlu0 %v1159_v14, %s3197_s20  ;;  %v1656_v14 = vsel %vm1075_vm9, %v3801_v55, %v1655_v48  ;;  %v1475_v26 = vrot.slane %v3818_v61, 1  ;;  %v1731_v48 = vrot.slane %v1572_v36, 1 }
 0x146   : > { %v1386_v19 = vrot.slane %v1384_v8, 1 }
 0x148   : > { %v1387_v53 = vor.u32 %v1386_v19, %v1382_v25  ;;  %v1360_v19 = vshll.u32 %v3530_v29, 16 }
 0x149   : > { %1545 = vrot.lane.b32.xlu1 %v3776_v58, %s3198_s10 }
 0x14b   : > { %v3804_v56 = vpop.permute.xlu1 %1293 }
 0x14c   : > { %1305 = vrot.lane.b32.xlu2 %v3770_v0, %s3196_s21 }
 0x14d   : > { %1489 = vrot.lane.b32.xlu0 %v1473_v46, %s3197_s20  ;;  %v1389_v46 = vshll.u32 %v3653_v27, 16 }
 0x14e   : > { %v1670_v42 = vpop.permute.xlu2 %1669 }
 0x151   : > { %1251 = vrot.lane.b32.xlu1 %v1236_v4, %s3198_s10 }
 0x152   : > { %2669 = vmatmul.msk.bf16.gmra.mxu2 %vm1733_vm10, %v1729_v54  ;;  %v1391_v54 = vrot.slane %v1389_v46, 1 }
 0x154   : > { %1681 = vrot.lane.b32.xlu2 %v1656_v14, %s3196_s21  ;;  %v1478_v31 = vpop.permute.xlu1 %1477  ;;  %v3834_v27 = vsel %vm1075_vm9, %v1387_v53, %v1391_v54  ;;  %v1355_v14 = vrot.slane %v1353_v11, 1 }
 0x155   : > { %1186 = vrot.lane.b32.xlu0 %v1171_v18, %s3197_s20  ;;  %v1794_v37 = vsel %vm1733_vm10, %v1344_v57, %v1478_v31  ;;  %v1406_v57 = vshrl.u32 %v3770_v0, 16  ;;  %v1410_v31 = vrot.slane %v1408_v24, 1 }
 0x156   : > { %v1296_v30 = vpop.permute.xlu2 %1295  ;;  %v1817_v3 = vsel %vm1750_vm11, %v1794_v37, %v3773_v7  ;;  %v1476_v7 = vsel %vm1212_vm8, %v1474_v39, %v1475_v26  ;;  %v1413_v37 = vshll.u32 %v3783_v32, 16  ;;  %v3026_v26 = vld [vmem:[#allocation2 + $0x18] sm:$0xff]  }
 0x157   : > { %v1173_v33 = vpop.permute.xlu0 %1172  ;;  %v1833_v22 = vsel %vm1767_vm12, %v1817_v3, %v1670_v42  ;;  %v1411_v3 = vor.u32 %v1410_v31, %v1406_v57 }
 0x158   : > { %2085 = vmatmul.bf16.vlgmr.msrb.gmra.mxu1 %v1833_v22  ;;  %v1735_v2 = vsel %vm1733_vm10, %v3025_v63, %v1173_v33  ;;  %v1415_v39 = vrot.slane %v1413_v37, 1 }
 0x159   : > { %1547 = vrot.lane.b32.xlu1 %v3793_v44, %s3198_s10 }
 0x15a   : > { %v3863_v49 = vsel %vm1075_vm9, %v1411_v3, %v1415_v39 }
 0x15c   : > { %1307 = vrot.lane.b32.xlu2 %v3776_v58, %s3196_s21  ;;  %v1732_v58 = vsel %vm1212_vm8, %v1730_v45, %v1731_v48  ;;  %v1240_v8 = vpop.permute.xlu1 %1239 }
 0x15d   : > { %1491 = vrot.lane.b32.xlu0 %v1476_v7, %s3197_s20  ;;  %s2737_s20 = sshll.u32 %s3176_s27, 4 }
 0x15e   : > { %v1672_v42 = vpop.permute.xlu2 %1671  ;;  %s2401_s9 = sadd.s32 %s2737_s20, %s2690_s13 }
 0x15f   : > { %v1238_v5 = vpop.permute.xlu0 %1237  ;;  %s2691_s18 = sshll.u32 %s2401_s9, 2 }
 0x160   : > { %v1752_v41 = vsel %vm1750_vm11, %v1735_v2, %v1238_v5  ;;  %v1379_v2 = vrot.slane %v1377_v59, 1  ;;  %s2403_s27 = scalar_lea.hbm %s4048_s7, %s2691_s18  ;;  %s3102_s18 = scalar_lea.hbm %s4048_s7, 256 }
 0x161   : > { %v1769_v44 = vsel %vm1767_vm12, %v1752_v41, %v3804_v56  ;;  %v1356_v56 = vsel %vm1075_vm9, %v3497_v21, %v1355_v14  ;;  %v1362_v21 = vrot.slane %v1360_v19, 1  ;;  %v2736_v19 = vld [vmem:[%s4046_s5 + $0x8] sm:$0xff] }
 0x162   : > { %2670 = vmatmul.msk.bf16.gmra.mxu2 %vm1733_vm10, %v1732_v58  ;;  %2036 = vmatmul.bf16.vlgmr.msrb.gmra.mxu3 %v1769_v44  ;;  %v1380_v41 = vsel %vm1075_vm9, %v3572_v34, %v1379_v2 }
 0x163   : > { %v1363_v22 = vor.u32 %v1362_v21, %v1358_v38  ;;  %2249 = vmatpush.bf16.msrb.mxu0 %v2736_v19 }
 0x164   : > { %1683 = vrot.lane.b32.xlu2 %v1668_v35, %s3196_s21  ;;  %s3962_s21 = scalar_lea.vmem [#allocation6], %s2508_s17 }
 0x165   : > { %s2404_s28 = sshll.u32 %s3962_s21, 4  ;;  %s2405_s28 = int_to_ptr.vmem [resolvable:$true] %s2404_s28 }
 0x166   : > { %v1298_v1 = vpop.permute.xlu2 %1297 }
 0x167   : > { %v1175_v10 = vpop.permute.xlu0 %1174 }
 0x168   : > { %v1737_v12 = vsel %vm1733_vm10, %v3455_v6, %v1175_v10 }
 0x169   : > { %v1754_v4 = vsel %vm1750_vm11, %v1737_v12, %v1240_v8  ;;  %v3027_v12 = vld [vmem:[#allocation2 + $0x30] sm:$0xff]  }
 0x16a   : > { %v1772_v25 = vsel %vm1767_vm12, %v1754_v4, %v1296_v30  ;;  %v1365_v30 = vshll.u32 %v3559_v9, 16 }
 0x16b   : > { %v1536_v16 = vpop.permute.xlu1 %1535 }
 0x16c   : > { %v1367_v0 = vrot.slane %v1365_v30, 1 }
 0x16e   : > { %v1674_v15 = vpop.permute.xlu2 %1673  ;;  %v1368_v53 = vsel %vm1075_vm9, %v1363_v22, %v1367_v0 }
 0x16f   : > { %v1480_v17 = vpop.permute.xlu0 %1479 }
 0x170   : > { %v1797_v18 = vsel %vm1733_vm10, %v1356_v56, %v1480_v17 }
 0x171   : > { %v1819_v23 = vsel %vm1750_vm11, %v1797_v18, %v1536_v16 }
 0x172   : > { %2041 = vmatmul.bf16.gmra.mxu3 %v1772_v25  ;;  %v1836_v6 = vsel %vm1767_vm12, %v1819_v23, %v1672_v42 }
 0x173   : > { %2090 = vmatmul.bf16.gmra.mxu1 %v1836_v6  ;;  %v1242_v51 = vpop.permute.xlu1 %1241  ;;  %v1401_v6 = vshll.u32 %v3749_v28, 16 }
 0x175   : > { %v1403_v31 = vrot.slane %v1401_v6, 1 }
 0x176   : > { %v1300_v36 = vpop.permute.xlu2 %1299 }
 0x177   : > { %v1177_v33 = vpop.permute.xlu0 %1176 }
 0x178   : > { %v1739_v46 = vsel %vm1733_vm10, %v3026_v26, %v1177_v33 }
 0x179   : > { %v1756_v50 = vsel %vm1750_vm11, %v1739_v46, %v1242_v51 }
 0x17a   : > { %v1775_v45 = vsel %vm1767_vm12, %v1756_v50, %v1298_v1 }
 0x17b   : > { %v1538_v52 = vpop.permute.xlu1 %1537 }
 0x17e   : > { %v1676_v54 = vpop.permute.xlu2 %1675 }
 0x17f   : > { %v1482_v32 = vpop.permute.xlu0 %1481 }
 0x180   : > { %v1800_v29 = vsel %vm1733_vm10, %v1368_v53, %v1482_v32 }
 0x181   : > { %v1821_v9 = vsel %vm1750_vm11, %v1800_v29, %v1538_v52 }
 0x182   : > { %2046 = vmatmul.bf16.gmra.mxu3 %v1775_v45  ;;  %v1839_v48 = vsel %vm1767_vm12, %v1821_v9, %v1674_v15  ;;  %v1425_v45 = vshll.u32 %v3818_v61, 16 }
 0x183   : > { %2095 = vmatmul.bf16.gmra.mxu1 %v1839_v48  ;;  %v1244_v7 = vpop.permute.xlu1 %1243  ;;  %v2135_v48 = vpop.f32.mrf.mxu2 }
 0x186   : > { %v1302_v62 = vpop.permute.xlu2 %1301 }
 0x187   : > { %v1179_v42 = vpop.permute.xlu0 %1178 }
 0x188   : > { %v1741_v63 = vsel %vm1733_vm10, %v3545_v60, %v1179_v42  ;;  %v1427_v42 = vrot.slane %v1425_v45, 1 }
 0x189   : > { %v1758_v5 = vsel %vm1750_vm11, %v1741_v63, %v1244_v7 }
 0x18a   : > { %v1778_v8 = vsel %vm1767_vm12, %v1758_v5, %v1300_v36  ;;  %v1404_v36 = vsel %vm1075_vm9, %v3719_v47, %v1403_v31  ;;  %v2735_v47 = vld [vmem:[%s4046_s5] sm:$0xff] }
 0x18b   : > { %v1540_v58 = vpop.permute.xlu1 %1539  ;;  %2250 = vmatpush.bf16.msrb.mxu0 %v2735_v47 }
 0x18e   : > { %v1678_v10 = vpop.permute.xlu2 %1677 }
 0x18f   : > { %v1484_v44 = vpop.permute.xlu0 %1483 }
 0x190   : > { %v1803_v35 = vsel %vm1733_vm10, %v1380_v41, %v1484_v44 }
 0x191   : > { %v1823_v1 = vsel %vm1750_vm11, %v1803_v35, %v1540_v58 }
 0x192   : > { %2051 = vmatmul.bf16.gmra.mxu3 %v1778_v8  ;;  %v1842_v13 = vsel %vm1767_vm12, %v1823_v1, %v1676_v54  ;;  %v3925_v1 = vld [vmem:[%s4045_s4] ss:$0 sm:$0xff] }
 0x193   : > { %2100 = vmatmul.bf16.gmra.mxu1 %v1842_v13  ;;  %v1246_v60 = vpop.permute.xlu1 %1245 }
 0x196   : > { %v1304_v16 = vpop.permute.xlu2 %1303 }
 0x197   : > { %v1181_v11 = vpop.permute.xlu0 %1180 }
 0x198   : > { %v1743_v14 = vsel %vm1733_vm10, %v3027_v12, %v1181_v11 }
 0x199   : > { %v1760_v15 = vsel %vm1750_vm11, %v1743_v14, %v1246_v60 }
 0x19a   : > { %v1781_v18 = vsel %vm1767_vm12, %v1760_v15, %v1302_v62  ;;  %v1428_v62 = vsel %vm1075_vm9, %v3801_v55, %v1427_v42 }
 0x19b   : > { %v1542_v34 = vpop.permute.xlu1 %1541 }
 0x19e   : > { %v1680_v57 = vpop.permute.xlu2 %1679 }
 0x19f   : > { %v1486_v4 = vpop.permute.xlu0 %1485 }
 0x1a0   : > { %v1806_v56 = vsel %vm1733_vm10, %v3834_v27, %v1486_v4 }
 0x1a1   : > { %v1825_v17 = vsel %vm1750_vm11, %v1806_v56, %v1542_v34 }
 0x1a2   : > { %2056 = vmatmul.bf16.gmra.mxu3 %v1781_v18  ;;  %v1845_v23 = vsel %vm1767_vm12, %v1825_v17, %v1678_v10 }
 0x1a3   : > { %2105 = vmatmul.bf16.gmra.mxu1 %v1845_v23  ;;  %v1248_v25 = vpop.permute.xlu1 %1247 }
 0x1a6   : > { %v1306_v3 = vpop.permute.xlu2 %1305 }
 0x1a7   : > { %v1183_v24 = vpop.permute.xlu0 %1182 }
 0x1a8   : > { %v1745_v27 = vsel %vm1733_vm10, %v3646_v20, %v1183_v24 }
 0x1a9   : > { %v1762_v51 = vsel %vm1750_vm11, %v1745_v27, %v1248_v25 }
 0x1aa   : > { %v1784_v38 = vsel %vm1767_vm12, %v1762_v51, %v1304_v16 }
 0x1ab   : > { %v1544_v21 = vpop.permute.xlu1 %1543 }
 0x1ae   : > { %v1682_v46 = vpop.permute.xlu2 %1681 }
 0x1af   : > { %v1488_v33 = vpop.permute.xlu0 %1487 }
 0x1b0   : > { %v1809_v37 = vsel %vm1733_vm10, %v1404_v36, %v1488_v33 }
 0x1b1   : > { %v1827_v28 = vsel %vm1750_vm11, %v1809_v37, %v1544_v21 }
 0x1b2   : > { %2061 = vmatmul.bf16.gmra.mxu3 %v1784_v38  ;;  %v1848_v30 = vsel %vm1767_vm12, %v1827_v28, %v1680_v57 }
 0x1b3   : > { %2110 = vmatmul.bf16.gmra.mxu1 %v1848_v30  ;;  %v1250_v20 = vpop.permute.xlu1 %1249 }
 0x1b6   : > { %v1308_v54 = vpop.permute.xlu2 %1307 }
 0x1b7   : > { %v1185_v39 = vpop.permute.xlu0 %1184 }
 0x1b8   : > { %v1747_v26 = vsel %vm1733_vm10, %v3662_v40, %v1185_v39 }
 0x1b9   : > { %v1764_v22 = vsel %vm1750_vm11, %v1747_v26, %v1250_v20 }
 0x1ba   : > { %v1787_v32 = vsel %vm1767_vm12, %v1764_v22, %v1306_v3 }
 0x1bb   : > { %v1546_v0 = vpop.permute.xlu1 %1545 }
 0x1be   : > { %v1684_v5 = vpop.permute.xlu2 %1683 }
 0x1bf   : > { %v1490_v50 = vpop.permute.xlu0 %1489 }
 0x1c0   : > { %v1812_v52 = vsel %vm1733_vm10, %v3863_v49, %v1490_v50 }
 0x1c1   : > { %v1829_v53 = vsel %vm1750_vm11, %v1812_v52, %v1546_v0 }
 0x1c2   : > { %2066 = vmatmul.bf16.gmra.mxu3 %v1787_v32  ;;  %v1851_v40 = vsel %vm1767_vm12, %v1829_v53, %v1682_v46 }
 0x1c3   : > { %2115 = vmatmul.bf16.gmra.mxu1 %v1851_v40  ;;  %v1252_v29 = vpop.permute.xlu1 %1251 }
 0x1c7   : > { %v1187_v9 = vpop.permute.xlu0 %1186 }
 0x1c8   : > { %v1749_v7 = vsel %vm1733_vm10, %v3767_v43, %v1187_v9  ;;  %v2137_v43 = vpop.f32.mrf.mxu2 }
 0x1c9   : > { %v1766_v49 = vsel %vm1750_vm11, %v1749_v7, %v1252_v29 }
 0x1ca   : > { %v1790_v41 = vsel %vm1767_vm12, %v1766_v49, %v1308_v54 }
 0x1cb   : > { %v1548_v59 = vpop.permute.xlu1 %1547 }
 0x1cf   : > { %v1492_v63 = vpop.permute.xlu0 %1491 }
 0x1d0   : > { %v1815_v2 = vsel %vm1733_vm10, %v1428_v62, %v1492_v63  ;;  %v2140_v35 = vpop.f32.mrf.mxu2 }
 0x1d1   : > { %v1831_v58 = vsel %vm1750_vm11, %v1815_v2, %v1548_v59 }
 0x1d2   : > { %2071 = vmatmul.bf16.gmra.mxu3 %v1790_v41  ;;  %v1854_v61 = vsel %vm1767_vm12, %v1831_v58, %v1684_v5 }
 0x1d3   : > { %2120 = vmatmul.bf16.gmra.mxu1 %v1854_v61 }
 0x1d5   : > { %v2086_v44 = vpop.f32.mrf.mxu1 }
 0x1d8   : > { %v2142_v10 = vpop.f32.mrf.mxu2 }
 0x1dd   : > { %v2088_v8 = vpop.f32.mrf.mxu1 }
 0x1e0   : > { %v2145_v4 = vpop.f32.mrf.mxu2 }
 0x1e5   : > { %v2037_v55 = vpop.f32.mrf.mxu3 }
 0x1e6   : > { %v2038_v13 = vadd.f32 %v3925_v1, %v2037_v55 }
 0x1e8   : > { %v2087_v60 = vadd.f32 %v2086_v44, %v2038_v13  ;;  %v2147_v19 = vpop.f32.mrf.mxu2 }
 0x1ea   : > { %v2136_v14 = vadd.f32 %v2135_v48, %v2087_v60 }
 0x1ec   : > { %v2175_v56 = vmax.f32 %v2136_v14, 0.0 }
 0x1ed   : > { %v2039_v11 = vpop.f32.mrf.mxu3 }
 0x1ee   : > { %v2040_v12 = vadd.f32 %v3925_v1, %v2039_v11 }
 0x1f0   : > { %v2089_v15 = vadd.f32 %v2088_v8, %v2040_v12  ;;  %v2091_v34 = vpop.f32.mrf.mxu1  ;;  %v2150_v30 = vpop.f32.mrf.mxu2 }
 0x1f2   : > { %v2138_v16 = vadd.f32 %v2137_v43, %v2089_v15 }
 0x1f4   : > { %v2176_v17 = vmax.f32 %v2138_v16, 0.0 }
 0x1f5   : > { %v2042_v18 = vpop.f32.mrf.mxu3 }
 0x1f6   : > { %v2191_v23 = vpack.c.bf16 %v2176_v17, %v2175_v56  ;;  %v2043_v25 = vadd.f32 %v3925_v1, %v2042_v18 }
 0x1f8   : > { %v2093_v24 = vpop.f32.mrf.mxu1  ;;  %2679 = vmatmul.msk.bf16.vlgmr.msrb.gmra.mxu0 %vm1733_vm10, %v2191_v23  ;;  %v2092_v6 = vadd.f32 %v2091_v34, %v2043_v25  ;;  %v2152_v50 = vpop.f32.mrf.mxu2 }
 0x1fa   : > { %v2141_v31 = vadd.f32 %v2140_v35, %v2092_v6 }
 0x1fc   : > { %v2177_v33 = vmax.f32 %v2141_v31, 0.0 }
 0x1fd   : > { %v2044_v57 = vpop.f32.mrf.mxu3 }
 0x1fe   : > { %v2045_v27 = vadd.f32 %v3925_v1, %v2044_v57 }
 0x200   : > { %v2094_v51 = vadd.f32 %v2093_v24, %v2045_v27  ;;  %v2096_v21 = vpop.f32.mrf.mxu1  ;;  %v2155_v45 = vpop.f32.mrf.mxu2 }
 0x202   : > { %v2143_v36 = vadd.f32 %v2142_v10, %v2094_v51 }
 0x204   : > { %v2178_v37 = vmax.f32 %v2143_v36, 0.0 }
 0x205   : > { %v2047_v28 = vpop.f32.mrf.mxu3 }
 0x206   : > { %v2192_v38 = vpack.c.bf16 %v2178_v37, %v2177_v33  ;;  %v2048_v3 = vadd.f32 %v3925_v1, %v2047_v28 }
 0x208   : > { %v2098_v20 = vpop.f32.mrf.mxu1  ;;  %2680 = vmatmul.msk.bf16.gmra.mxu0 %vm1733_vm10, %v2192_v38  ;;  %v2097_v39 = vadd.f32 %v2096_v21, %v2048_v3  ;;  %v2157_v58 = vpop.f32.mrf.mxu2 }
 0x20a   : > { %v2146_v46 = vadd.f32 %v2145_v4, %v2097_v39 }
 0x20c   : > { %v2179_v53 = vmax.f32 %v2146_v46, 0.0 }
 0x20d   : > { %v2049_v26 = vpop.f32.mrf.mxu3 }
 0x20e   : > { %v2050_v47 = vadd.f32 %v3925_v1, %v2049_v26 }
 0x210   : > { %v2099_v22 = vadd.f32 %v2098_v20, %v2050_v47  ;;  %v2101_v0 = vpop.f32.mrf.mxu1  ;;  %v2160_v13 = vpop.f32.mrf.mxu2 }
 0x212   : > { %v2148_v52 = vadd.f32 %v2147_v19, %v2099_v22 }
 0x214   : > { %v2180_v32 = vmax.f32 %v2148_v52, 0.0 }
 0x215   : > { %v2052_v40 = vpop.f32.mrf.mxu3 }
 0x216   : > { %v2193_v29 = vpack.c.bf16 %v2180_v32, %v2179_v53  ;;  %v2053_v54 = vadd.f32 %v3925_v1, %v2052_v40 }
 0x218   : > { %v2103_v9 = vpop.f32.mrf.mxu1  ;;  %2681 = vmatmul.msk.bf16.gmra.mxu0 %vm1733_vm10, %v2193_v29  ;;  %v2102_v48 = vadd.f32 %v2101_v0, %v2053_v54  ;;  %v2162_v17 = vpop.f32.mrf.mxu2 }
 0x21a   : > { %v2151_v49 = vadd.f32 %v2150_v30, %v2102_v48 }
 0x21c   : > { %v2181_v2 = vmax.f32 %v2151_v49, 0.0 }
 0x21d   : > { %v2054_v7 = vpop.f32.mrf.mxu3 }
 0x21e   : > { %v2055_v42 = vadd.f32 %v3925_v1, %v2054_v7 }
 0x220   : > { %v2104_v59 = vadd.f32 %v2103_v9, %v2055_v42  ;;  %v2106_v62 = vpop.f32.mrf.mxu1  ;;  %v2165_v27 = vpop.f32.mrf.mxu2 }
 0x222   : > { %v2153_v63 = vadd.f32 %v2152_v50, %v2104_v59 }
 0x224   : > { %v2182_v5 = vmax.f32 %v2153_v63, 0.0  ;;  %v3954_v63 = vld [vmem:[%s4047_s6] ss:$0 sm:$0xff] }
 0x225   : > { %v2057_v41 = vpop.f32.mrf.mxu3 }
 0x226   : > { %v2194_v61 = vpack.c.bf16 %v2182_v5, %v2181_v2  ;;  %v2058_v43 = vadd.f32 %v3925_v1, %v2057_v41  ;;  %v2787_v2 = vld [vmem:[%s3350_s12] sm:$0xff]  }
 0x227   : > { %v2788_v5 = vunpack.c.l.bf16 %v2787_v2 }
 0x228   : > { %v2108_v44 = vpop.f32.mrf.mxu1  ;;  %2682 = vmatmul.msk.bf16.gmra.mxu0 %vm1733_vm10, %v2194_v61  ;;  %v2107_v35 = vadd.f32 %v2106_v62, %v2058_v43  ;;  %v2167_v38 = vpop.f32.mrf.mxu2 }
 0x22a   : > { %v2156_v10 = vadd.f32 %v2155_v45, %v2107_v35 }
 0x22c   : > { %v2183_v14 = vmax.f32 %v2156_v10, 0.0  ;;  %v2904_v10 = vld [vmem:[%s3350_s12 + $0x8] sm:$0xff]  }
 0x22d   : > { %v2059_v55 = vpop.f32.mrf.mxu3 }
 0x22e   : > { %v2060_v8 = vadd.f32 %v3925_v1, %v2059_v55 }
 0x230   : > { %v2109_v60 = vadd.f32 %v2108_v44, %v2060_v8  ;;  %v2111_v11 = vpop.f32.mrf.mxu1  ;;  %v2170_v52 = vpop.f32.mrf.mxu2 }
 0x232   : > { %v2158_v12 = vadd.f32 %v2157_v58, %v2109_v60  ;;  %v2789_v58 = vunpack.c.h.bf16 %v2787_v2 }
 0x234   : > { %v2184_v15 = vmax.f32 %v2158_v12, 0.0  ;;  %v2793_v12 = vunpack.c.h.bf16 %v2904_v10 }
 0x235   : > { %v2062_v34 = vpop.f32.mrf.mxu3 }
 0x236   : > { %v2195_v16 = vpack.c.bf16 %v2184_v15, %v2183_v14  ;;  %v2063_v4 = vadd.f32 %v3925_v1, %v2062_v34 }
 0x238   : > { %v2113_v56 = vpop.f32.mrf.mxu1  ;;  %2683 = vmatmul.msk.bf16.gmra.mxu0 %vm1733_vm10, %v2195_v16  ;;  %v2112_v18 = vadd.f32 %v2111_v11, %v2063_v4  ;;  %v2172_v48 = vpop.f32.mrf.mxu2  ;;  %v2792_v11 = vunpack.c.l.bf16 %v2904_v10 }
 0x23a   : > { %v2161_v24 = vadd.f32 %v2160_v13, %v2112_v18 }
 0x23c   : > { %v2185_v31 = vmax.f32 %v2161_v24, 0.0 }
 0x23d   : > { %v2064_v23 = vpop.f32.mrf.mxu3 }
 0x23e   : > { %v2065_v25 = vadd.f32 %v3925_v1, %v2064_v23  ;;  %v2905_v23 = vld [vmem:[%s3350_s12 + $0x10] sm:$0xff]  }
 0x23f   : > { %v2796_v24 = vunpack.c.l.bf16 %v2905_v23 }
 0x240   : > { %v2114_v6 = vadd.f32 %v2113_v56, %v2065_v25  ;;  %v2116_v19 = vpop.f32.mrf.mxu1 }
 0x242   : > { %v2163_v57 = vadd.f32 %v2162_v17, %v2114_v6  ;;  %v2797_v6 = vunpack.c.h.bf16 %v2905_v23 }
 0x244   : > { %v2186_v51 = vmax.f32 %v2163_v57, 0.0 }
 0x245   : > { %v2067_v21 = vpop.f32.mrf.mxu3 }
 0x246   : > { %v2196_v36 = vpack.c.bf16 %v2186_v51, %v2185_v31  ;;  %v2068_v33 = vadd.f32 %v3925_v1, %v2067_v21 }
 0x248   : > { %2684 = vmatmul.msk.bf16.gmra.mxu0 %vm1733_vm10, %v2196_v36  ;;  %v2118_v37 = vpop.f32.mrf.mxu1  ;;  %v2117_v28 = vadd.f32 %v2116_v19, %v2068_v33 }
 0x24a   : > { %v2166_v20 = vadd.f32 %v2165_v27, %v2117_v28 }
 0x24c   : > { %v2187_v47 = vmax.f32 %v2166_v20, 0.0 }
 0x24d   : > { %v2069_v30 = vpop.f32.mrf.mxu3 }
 0x24e   : > { %v2070_v3 = vadd.f32 %v3925_v1, %v2069_v30 }
 0x250   : > { %v2119_v39 = vadd.f32 %v2118_v37, %v2070_v3  ;;  %v2121_v22 = vpop.f32.mrf.mxu1  ;;  %v2906_v37 = vld [vmem:[%s3350_s12 + $0x18] sm:$0xff]  }
 0x251   : > { %v2801_v30 = vunpack.c.h.bf16 %v2906_v37 }
 0x252   : > { %v2168_v26 = vadd.f32 %v2167_v38, %v2119_v39  ;;  %v2800_v38 = vunpack.c.l.bf16 %v2906_v37 }
 0x254   : > { %v2188_v46 = vmax.f32 %v2168_v26, 0.0 }
 0x255   : > { %v2072_v0 = vpop.f32.mrf.mxu3 }
 0x256   : > { %v2197_v50 = vpack.c.bf16 %v2188_v46, %v2187_v47  ;;  %v2073_v53 = vadd.f32 %v3925_v1, %v2072_v0 }
 0x258   : > { %2685 = vmatmul.msk.bf16.gmra.mxu0 %vm1733_vm10, %v2197_v50  ;;  %v2122_v32 = vadd.f32 %v2121_v22, %v2073_v53  ;;  %v2123_v54 = vpop.f32.mrf.mxu1  ;;  %v2907_v50 = vld [vmem:[%s3350_s12 + $0x20] sm:$0xff]  }
 0x259   : > { %v2804_v53 = vunpack.c.l.bf16 %v2907_v50 }
 0x25a   : > { %v2171_v9 = vadd.f32 %v2170_v52, %v2122_v32  ;;  %v2805_v32 = vunpack.c.h.bf16 %v2907_v50 }
 0x25c   : > { %v2189_v42 = vmax.f32 %v2171_v9, 0.0 }
 0x25d   : > { %v2074_v40 = vpop.f32.mrf.mxu3 }
 0x25e   : > { %v2075_v29 = vadd.f32 %v3925_v1, %v2074_v40 }
 0x260   : > { %v2124_v45 = vadd.f32 %v2123_v54, %v2075_v29 }
 0x262   : > { %v2173_v7 = vadd.f32 %v2172_v48, %v2124_v45 }
 0x264   : > { %v2190_v49 = vmax.f32 %v2173_v7, 0.0 }
 0x266   : > { %v2198_v59 = vpack.c.bf16 %v2190_v49, %v2189_v42  ;;  %v2908_v49 = vld [vmem:[%s3350_s12 + $0x28] sm:$0xff]  }
 0x267   : > { %v2809_v2 = vunpack.c.h.bf16 %v2908_v49 }
 0x268   : > { %2686 = vmatmul.msk.bf16.gmra.mxu0 %vm1733_vm10, %v2198_v59 }
 0x275   : > { %v2252_v62 = vpop.f32.mrf.mxu0 }
 0x276   : > { %v2253_v1 = vadd.f32 %v3954_v63, %v2252_v62  ;;  %v2808_v62 = vunpack.c.l.bf16 %v2908_v49 }
 0x278   : > { %v2324_v61 = vadd.f32 %v2788_v5, %v2253_v1 }
 0x27a   : > { %v2340_v35 = vmax.f32 %v2324_v61, 0.0 }
 0x27d   : > { %v2254_v41 = vpop.f32.mrf.mxu0 }
 0x27e   : > { %v2255_v43 = vadd.f32 %v3954_v63, %v2254_v41 }
 0x280   : > { %v2325_v44 = vadd.f32 %v2789_v58, %v2255_v43 }
 0x282   : > { %v2341_v55 = vmax.f32 %v2325_v44, 0.0 }
 0x284   : > { %v2821_v8 = vpack.c.bf16 %v2341_v55, %v2340_v35  ;;  %v2909_v55 = vld [vmem:[%s3350_s12 + $0x30] sm:$0xff]  }
 0x285   : > { %v2257_v13 = vpop.f32.mrf.mxu0  ;;  %v2813_v10 = vunpack.c.h.bf16 %v2909_v55 }
 0x286   : > { %2822 = vst [vmem:[%s3962_s21] sm:$0xff] %v2821_v8   ;;  %v2258_v60 = vadd.f32 %v3954_v63, %v2257_v13  ;;  %v2812_v13 = vunpack.c.l.bf16 %v2909_v55 }
 0x288   : > { %v2326_v15 = vadd.f32 %v2792_v11, %v2258_v60 }
 0x28a   : > { %v2342_v4 = vmax.f32 %v2326_v15, 0.0 }
 0x28d   : > { %v2259_v14 = vpop.f32.mrf.mxu0 }
 0x28e   : > { %v2260_v34 = vadd.f32 %v3954_v63, %v2259_v14 }
 0x290   : > { %v2327_v16 = vadd.f32 %v2793_v12, %v2260_v34 }
 0x292   : > { %v2343_v56 = vmax.f32 %v2327_v16, 0.0 }
 0x294   : > { %v2826_v17 = vpack.c.bf16 %v2343_v56, %v2342_v4  ;;  %v2910_v56 = vld [vmem:[%s3350_s12 + $0x38] sm:$0xff]   ;;  %s2406_s12 = sshll.u32 %s2403_s27, 4  ;;  %s2407_s12 = int_to_ptr.hbm [resolvable:$true] %s2406_s12 }
 0x295   : > { %v2262_v18 = vpop.f32.mrf.mxu0  ;;  %v2817_v23 = vunpack.c.h.bf16 %v2910_v56  ;;  %s3096_s17 = sshra.s32 %s2407_s12, 4  ;;  %s3097_s17 = int_to_ptr.hbm [resolvable:$true] %s3096_s17 }
 0x296   : > { %2911 = vst [vmem:[%s3962_s21 + $0x8] sm:$0xff] %v2826_v17   ;;  %v2263_v25 = vadd.f32 %v3954_v63, %v2262_v18  ;;  %v2816_v18 = vunpack.c.l.bf16 %v2910_v56  ;;  %s3098_s20 = scalar_lea.hbm %s3097_s17, 64  ;;  %p3103_p11 = scmp.lt.s32.totalorder %s3097_s17, %s4048_s7 }
 0x297   : > { %p3099_p7 = scmp.ne.s32.totalorder %s3097_s17, %s3098_s20  ;;  %p3104_p12 = scmp.lt.s32.totalorder %s3102_s18, %s3098_s20 }
 0x298   : > { %v2328_v57 = vadd.f32 %v2796_v24, %v2263_v25 }
 0x299   : > { %p3100_p9 = pnand %p3099_p7, %p3292_p3  ;;  %p3105_p13 = por %p3104_p12, %p3103_p11 }
 0x29a   : > { %v2344_v51 = vmax.f32 %v2328_v57, 0.0 }
 0x29b   : > { %p3101_p10 = pneg %p3100_p9 }
 0x29d   : > { %v2264_v19 = vpop.f32.mrf.mxu0  ;;  %p3106_p0 = pnand %p3105_p13, %p3101_p10 }
 0x29e   : > { %v2265_v27 = vadd.f32 %v3954_v63, %v2264_v19 }
 0x2a0   : > { %v2329_v31 = vadd.f32 %v2797_v6, %v2265_v27 }
 0x2a2   : > { %v2345_v21 = vmax.f32 %v2329_v31, 0.0 }
 0x2a4   : > { %v2831_v36 = vpack.c.bf16 %v2345_v21, %v2344_v51 }
 0x2a5   : > { %v2267_v33 = vpop.f32.mrf.mxu0 }
 0x2a6   : > { %2912 = vst [vmem:[%s3962_s21 + $0x10] sm:$0xff] %v2831_v36   ;;  %v2268_v28 = vadd.f32 %v3954_v63, %v2267_v33 }
 0x2a8   : > { %v2330_v20 = vadd.f32 %v2800_v38, %v2268_v28 }
 0x2aa   : > { %v2346_v47 = vmax.f32 %v2330_v20, 0.0 }
 0x2ad   : > { %v2269_v3 = vpop.f32.mrf.mxu0 }
 0x2ae   : > { %v2270_v39 = vadd.f32 %v3954_v63, %v2269_v3 }
 0x2b0   : > { %v2331_v26 = vadd.f32 %v2801_v30, %v2270_v39 }
 0x2b2   : > { %v2347_v46 = vmax.f32 %v2331_v26, 0.0 }
 0x2b4   : > { %v2836_v22 = vpack.c.bf16 %v2347_v46, %v2346_v47 }
 0x2b5   : > { %v2272_v0 = vpop.f32.mrf.mxu0 }
 0x2b6   : > { %2913 = vst [vmem:[%s3962_s21 + $0x18] sm:$0xff] %v2836_v22   ;;  %v2273_v52 = vadd.f32 %v3954_v63, %v2272_v0 }
 0x2b8   : > { %v2332_v29 = vadd.f32 %v2804_v53, %v2273_v52 }
 0x2ba   : > { %v2348_v45 = vmax.f32 %v2332_v29, 0.0 }
 0x2bd   : > { %v2274_v40 = vpop.f32.mrf.mxu0 }
 0x2be   : > { %v2275_v54 = vadd.f32 %v3954_v63, %v2274_v40 }
 0x2c0   : > { %v2333_v9 = vadd.f32 %v2805_v32, %v2275_v54 }
 0x2c2   : > { %v2349_v48 = vmax.f32 %v2333_v9, 0.0 }
 0x2c4   : > { %v2841_v7 = vpack.c.bf16 %v2349_v48, %v2348_v45 }
 0x2c5   : > { %v2277_v42 = vpop.f32.mrf.mxu0 }
 0x2c6   : > { %2914 = vst [vmem:[%s3962_s21 + $0x20] sm:$0xff] %v2841_v7   ;;  %v2278_v59 = vadd.f32 %v3954_v63, %v2277_v42 }
 0x2c8   : > { %v2334_v5 = vadd.f32 %v2808_v62, %v2278_v59 }
 0x2ca   : > { %v2350_v61 = vmax.f32 %v2334_v5, 0.0 }
 0x2cd   : > { %v2279_v1 = vpop.f32.mrf.mxu0 }
 0x2ce   : > { %v2280_v58 = vadd.f32 %v3954_v63, %v2279_v1 }
 0x2d0   : > { %v2335_v41 = vadd.f32 %v2809_v2, %v2280_v58 }
 0x2d2   : > { %v2351_v43 = vmax.f32 %v2335_v41, 0.0 }
 0x2d4   : > { %v2846_v44 = vpack.c.bf16 %v2351_v43, %v2350_v61 }
 0x2d5   : > { %v2282_v35 = vpop.f32.mrf.mxu0 }
 0x2d6   : > { %2915 = vst [vmem:[%s3962_s21 + $0x28] sm:$0xff] %v2846_v44   ;;  %v2283_v8 = vadd.f32 %v3954_v63, %v2282_v35 }
 0x2d8   : > { %v2336_v11 = vadd.f32 %v2812_v13, %v2283_v8 }
 0x2da   : > { %v2352_v15 = vmax.f32 %v2336_v11, 0.0 }
 0x2dd   : > { %v2284_v60 = vpop.f32.mrf.mxu0 }
 0x2de   : > { %v2285_v12 = vadd.f32 %v3954_v63, %v2284_v60 }
 0x2e0   : > { %v2337_v14 = vadd.f32 %v2813_v10, %v2285_v12 }
 0x2e2   : > { %v2353_v34 = vmax.f32 %v2337_v14, 0.0 }
 0x2e4   : > { %v2851_v16 = vpack.c.bf16 %v2353_v34, %v2352_v15 }
 0x2e5   : > { %v2287_v4 = vpop.f32.mrf.mxu0 }
 0x2e6   : > { %2916 = vst [vmem:[%s3962_s21 + $0x30] sm:$0xff] %v2851_v16   ;;  %v2288_v17 = vadd.f32 %v3954_v63, %v2287_v4 }
 0x2e8   : > { %v2338_v24 = vadd.f32 %v2816_v18, %v2288_v17 }
 0x2ea   : > { %v2354_v57 = vmax.f32 %v2338_v24, 0.0 }
 0x2ed   : > { %v2289_v25 = vpop.f32.mrf.mxu0 }
 0x2ee   : > { %v2290_v6 = vadd.f32 %v3954_v63, %v2289_v25 }
 0x2f0   : > { %v2339_v19 = vadd.f32 %v2817_v23, %v2290_v6 }
 0x2f2   : > { %v2355_v27 = vmax.f32 %v2339_v19, 0.0 }
 0x2f4   : > { %v2856_v31 = vpack.c.bf16 %v2355_v27, %v2354_v57 }
 0x2f6   : > { %2917 = vst [vmem:[%s3962_s21 + $0x38] sm:$0xff] %v2856_v31  }
 0x2f7   : > { %3109 = shalt.err (!%p3106_p0)
}
 0x2f8   : > { %s3199_s14 = smov 4  }
 0x2f9   : > { %2938 = dma.vmem_to_hbm [thread:$0]  (%p3292_p3), %s2405_s28, 1024, %s2407_s12, %s2389_s2, %s3198_s10, %s3198_s10, %s3199_s14  }
 0x2fa PF: > { %p2950_p1 = scmp.ge.s32.totalorder %s3192_s8, 2  ;;  %s2421_s21 = sand.u32 1, %s3164_s24  }
 0x2fb   : > { %s2422_s27 = scalar_lea.sflag [#allocation5], %s2421_s21 }
 0x2fc   : > { %p2945_p2 = pnand %p2950_p1, %p3301_p8 }
 0x2fe   : > { %p2946_p4 = pneg %p2945_p2 }
 0x300   : > { %3147 = dma.done.wait (%p2946_p4), %s2422_s27, 1024  }
 0x301   : > { %3149 = vsyncadd (%p2946_p4), %s2422_s27, 4294966272  ;;  %s21_s8 = sadd.s32 1, %s3192_s8   ;;  %s4064_s15 = sld [smem:[#allocation9_spill]] }
 0x302   : > { %p18_p5 = scmp.ge.s32.totalorder %s21_s8, 6   ;;  %s4065_s24 = smov %s3168_s25 }
 0x303   : > { %s4066_s25 = smov %s3172_s26  ;;  %s4067_s26 = smov %s3312_s22 }
 0x304   : > { %s4068_s27 = smov %s3184_s29  ;;  %s4069_s28 = smov %s3188_s30 }
 0x305   : > { %s4070_s29 = smov %s4073_s11  ;;  %20 = sbr.rel (!%p18_p5) target bundleno = 8 (0x8), region = 94 }
 0x307   : > { %s4071_s30 = smov %s4064_s15 }
 0x30a   :  { %2428 = vsyncpa [#allocation4], 1 }
 0x30b   :  { %2430 = vsyncpa [#allocation4 + $0x1], 1 }
 0x30c   :  { %2431 = vsyncpa [#allocation5], 1 }
 0x30d   :  { %2433 = vsyncpa [#allocation5 + $0x1], 1 }

</bundles_post_ra>
